<compile_context>
chip_gen: v6e
topology: v6e:2x2x1
jax: 0.10.0
libtpu: 0.0.40
codegen_flags: <defaults>
</compile_context>

<pallas_src>
import functools
import math

import jax
import jax.numpy as jnp
from jax import lax
from jax.experimental import pallas as pl
from jax.experimental.pallas import tpu as pltpu

_LN_EPS = 1e-5


def _gelu_tanh(x):
    # tanh-approximate GELU (lowers to the EUP tanh slot).
    # TODO(synk): nn.GELU() defaults to the exact erf form; the tanh
    # approximation differs by < ~1e-3 and is used here for a clean TPU path.
    c = math.sqrt(2.0 / math.pi)
    return 0.5 * x * (1.0 + jnp.tanh(c * (x + 0.044715 * (x * x * x))))


def _layer_norm(x, gamma, beta):
    mu = jnp.mean(x, axis=-1, keepdims=True)
    var = jnp.mean(jnp.square(x - mu), axis=-1, keepdims=True)
    return (x - mu) * lax.rsqrt(var + _LN_EPS) * gamma + beta


def _block_kernel(x_ref,
                  wqkv_ref, wproj_ref, wfc1_ref, wfc2_ref,
                  vec_ref,
                  o_ref,
                  *, block_b, seq_len, num_heads, head_dim, hidden_dim, scale):
    """Fused transformer block for one block of `block_b` batch elements.

    x_ref / o_ref : (R, C) f32, R = block_b * seq_len (rows = flattened (b, n))
    wqkv_ref      : (C, 3C) bf16      wproj_ref : (C, C) bf16
    wfc1_ref      : (C, Hd) bf16      wfc2_ref  : (Hd, C) bf16
    vec_ref       : (1, 9C + Hd) f32 packed
                    [ln1_g | ln1_b | ln2_g | ln2_b | b_qkv | b_proj | b_fc1 | b_fc2]
    """
    C = num_heads * head_dim
    Hd = hidden_dim
    R = block_b * seq_len

    # ---- unpack packed per-channel parameters (static, lane-aligned slices) --
    ln1_g = vec_ref[0, 0 * C:1 * C]
    ln1_b = vec_ref[0, 1 * C:2 * C]
    ln2_g = vec_ref[0, 2 * C:3 * C]
    ln2_b = vec_ref[0, 3 * C:4 * C]
    b_qkv = vec_ref[0, 4 * C:7 * C]
    b_proj = vec_ref[0, 7 * C:8 * C]
    b_fc1 = vec_ref[0, 8 * C:8 * C + Hd]
    b_fc2 = vec_ref[0, 8 * C + Hd:9 * C + Hd]

    x = x_ref[...]                                              # (R, C) f32

    # ---- LayerNorm 1 (f32) ----
    n1 = _layer_norm(x, ln1_g, ln1_b)

    # ---- QKV projection: one large-M MXU matmul over all rows of the block --
    qkv = jnp.dot(n1.astype(jnp.bfloat16), wqkv_ref[...],
                  preferred_element_type=jnp.float32) + b_qkv   # (R, 3C) f32
    qkv_bf = qkv.astype(jnp.bfloat16)

    # ---- multi-head self-attention: loop over heads (small, static), block's
    #      batch dimension folded into a batched dot_general.  Per-head
    #      outputs stay in vregs and are concatenated along lanes -> no
    #      masked partial stores anywhere in the attention path.
    heads_out = []
    for h in range(num_heads):
        lo = h * head_dim
        qh = qkv_bf[:, 0 * C + lo:0 * C + lo + head_dim]        # (R, D) bf16
        kh = qkv_bf[:, 1 * C + lo:1 * C + lo + head_dim]
        vh = qkv_bf[:, 2 * C + lo:2 * C + lo + head_dim]
        if block_b > 1:
            qh = qh.reshape(block_b, seq_len, head_dim)
            kh = kh.reshape(block_b, seq_len, head_dim)
            vh = vh.reshape(block_b, seq_len, head_dim)
            dn_qk = (((2,), (2,)), ((0,), (0,)))                # q @ k^T
            dn_pv = (((2,), (1,)), ((0,), (0,)))                # p @ v
        else:
            dn_qk = (((1,), (1,)), ((), ()))
            dn_pv = (((1,), (0,)), ((), ()))

        logits = lax.dot_general(qh, kh, dn_qk,
                                 preferred_element_type=jnp.float32) * scale
        logits = logits - jnp.max(logits, axis=-1, keepdims=True)
        p = jnp.exp(logits)
        # approx reciprocal (EUP slot); rows sum to 1 only to ~1e-3 -- fine
        # for inference-grade numerics, documented per review.
        p = p * pl.reciprocal(jnp.sum(p, axis=-1, keepdims=True), approx=True)
        oh = lax.dot_general(p.astype(jnp.bfloat16), vh, dn_pv,
                             preferred_element_type=jnp.float32)
        if block_b > 1:
            oh = oh.reshape(R, head_dim)
        heads_out.append(oh)                                    # (R, D) f32

    attn2d = (heads_out[0] if num_heads == 1
              else jnp.concatenate(heads_out, axis=-1))         # (R, C) f32

    # ---- output projection + residual 1 ----
    attn_out = jnp.dot(attn2d.astype(jnp.bfloat16), wproj_ref[...],
                       preferred_element_type=jnp.float32) + b_proj
    h1 = x + attn_out                                           # (R, C) f32

    # ---- LayerNorm 2 + MLP (fc1 -> GELU -> fc2) + residual 2 ----
    n2 = _layer_norm(h1, ln2_g, ln2_b)
    f1 = jnp.dot(n2.astype(jnp.bfloat16), wfc1_ref[...],
                 preferred_element_type=jnp.float32) + b_fc1    # (R, Hd)
    f1 = _gelu_tanh(f1)
    f2 = jnp.dot(f1.astype(jnp.bfloat16), wfc2_ref[...],
                 preferred_element_type=jnp.float32) + b_fc2    # (R, C)

    # Single full-tile lane-dense store.
    o_ref[...] = (h1 + f2).astype(o_ref.dtype)


def _pick_block_b(B, N, target_rows=512):
    """Choose batch elements per grid step.

    Preference order:
      1. grid >= 2 (block_b <= B // 2) so the "parallel" batch axis can shard
         across TensorCores (v7x megacore),
      2. rows per block as large as possible but <= target_rows (~512 rows
         reaches ~85% of HBM roofline; per-step overhead amortized),
      3. block rows a multiple of 8 (sublane) unless the block covers the
         whole array.
    """
    divisors = [d for d in range(1, B + 1) if B % d == 0]
    cap = max(target_rows, N)

    def rows_ok(d):
        return (d * N) % 8 == 0 or d == B

    for prefer_split in (True, False):
        cands = [d for d in divisors
                 if rows_ok(d) and d * N <= cap
                 and (not prefer_split or d <= B // 2)]
        if cands:
            return max(cands)
    return B  # full-array single-step fallback (rare; e.g. N not mult. of 8).


def transformer_block_pallas(x, params, *, num_heads):
    """x: (B, N, C) f32; params: dict of f32 arrays; returns (B, N, C) f32."""
    B, N, C = x.shape
    assert C % num_heads == 0
    D = C // num_heads
    Hd = params["w_fc1"].shape[1]
    scale = D ** (-0.5)

    block_b = _pick_block_b(B, N)
    R = block_b * N
    grid = (B // block_b,)

    # Flatten rows on the host so matmuls get a large M and slabs are 2-D.
    x2d = x.reshape(B * N, C)

    bf16, f32 = jnp.bfloat16, jnp.float32
    # Weights pre-cast to bf16 once on the host (bf16 MXU operands, f32 acc).
    w_qkv = params["w_qkv"].astype(bf16)
    w_proj = params["w_proj"].astype(bf16)
    w_fc1 = params["w_fc1"].astype(bf16)
    w_fc2 = params["w_fc2"].astype(bf16)

    # Pack all small per-channel vectors into ONE input (one pipeline slot).
    packed_vec = jnp.concatenate([
        params["ln1_g"], params["ln1_b"], params["ln2_g"], params["ln2_b"],
        params["b_qkv"], params["b_proj"], params["b_fc1"], params["b_fc2"],
    ]).astype(f32).reshape(1, 9 * C + Hd)

    kernel = functools.partial(_block_kernel, block_b=block_b, seq_len=N,
                               num_heads=num_heads, head_dim=D,
                               hidden_dim=Hd, scale=scale)

    rows_map = lambda i: (i, 0)
    # Constant index_map => weight blocks are DMA'd once (not re-streamed).
    const_map = lambda i: (0, 0)

    flops = (2 * B * N * C * 3 * C                 # qkv projection
             + 4 * B * num_heads * N * N * D       # q@k^T + p@v
             + 2 * B * N * C * C                   # output projection
             + 4 * B * N * C * Hd)                 # fc1 + fc2
    transcendentals = B * num_heads * N * N + B * N * Hd
    bytes_accessed = int(
        x2d.size * 4 * 2
        + 2 * (w_qkv.size + w_proj.size + w_fc1.size + w_fc2.size)
        + 4 * packed_vec.size)

    # Explicit, generation-aware VMEM budget (double-buffered x/out + resident
    # bf16 weights + packed vector + live f32 intermediates), with headroom,
    # capped at 64 MiB so the same tiling is valid on v7x.
    weight_bytes = 2 * (w_qkv.size + w_proj.size + w_fc1.size + w_fc2.size)
    vmem_est = (4 * R * C * 4
                + 2 * weight_bytes
                + 2 * packed_vec.size * 4
                + R * (3 * C + Hd + 4 * C) * 4)
    vmem_limit = int(min(64 * 1024 * 1024,
                         max(32 * 1024 * 1024, 2 * vmem_est)))

    out2d = pl.pallas_call(
        kernel,
        out_shape=jax.ShapeDtypeStruct((B * N, C), x.dtype),
        grid_spec=pltpu.PrefetchScalarGridSpec(
            num_scalar_prefetch=0,
            grid=grid,
            in_specs=[
                pl.BlockSpec((R, C), rows_map),            # x (flattened rows)
                pl.BlockSpec((C, 3 * C), const_map),       # w_qkv (bf16)
                pl.BlockSpec((C, C), const_map),           # w_proj (bf16)
                pl.BlockSpec((C, Hd), const_map),          # w_fc1 (bf16)
                pl.BlockSpec((Hd, C), const_map),          # w_fc2 (bf16)
                pl.BlockSpec((1, 9 * C + Hd), const_map),  # packed LN/bias vec
            ],
            out_specs=pl.BlockSpec((R, C), rows_map),
        ),
        compiler_params=pltpu.CompilerParams(
            dimension_semantics=("parallel",),
            vmem_limit_bytes=vmem_limit),
        cost_estimate=pl.CostEstimate(
            flops=flops, transcendentals=transcendentals,
            bytes_accessed=bytes_accessed),
    )(x2d, w_qkv, w_proj, w_fc1, w_fc2, packed_vec)

    return out2d.reshape(B, N, C)


def transformer_block_reference(x, params, *, num_heads):
    """Pure-JAX f32 reference mirroring the PyTorch TransformerBlock.forward."""
    B, N, C = x.shape
    D = C // num_heads
    scale = D ** (-0.5)

    def ln(t, g, b):
        mu = jnp.mean(t, axis=-1, keepdims=True)
        var = jnp.mean(jnp.square(t - mu), axis=-1, keepdims=True)
        return (t - mu) / jnp.sqrt(var + _LN_EPS) * g + b

    def attn(t):
        qkv = t @ params["w_qkv"] + params["b_qkv"]
        q, k, v = jnp.split(qkv, 3, axis=-1)

        def heads(u):                                  # b n (h d) -> b h n d
            return u.reshape(B, N, num_heads, D).transpose(0, 2, 1, 3)

        q, k, v = map(heads, (q, k, v))
        a = jnp.einsum("bhnd,bhmd->bhnm", q, k) * scale
        a = jax.nn.softmax(a, axis=-1)
        o = jnp.einsum("bhnm,bhmd->bhnd", a, v)
        o = o.transpose(0, 2, 1, 3).reshape(B, N, C)   # b h n d -> b n (h d)
        return o @ params["w_proj"] + params["b_proj"]

    def ffn(t):
        h = _gelu_tanh(t @ params["w_fc1"] + params["b_fc1"])
        return h @ params["w_fc2"] + params["b_fc2"]

    x = x + attn(ln(x, params["ln1_g"], params["ln1_b"]))
    x = x + ffn(ln(x, params["ln2_g"], params["ln2_b"]))
    return x


if __name__ == "__main__":
    # Small shapes consistent with the module's forward: (B, N, C).
    # C=128 keeps every lane dimension (C, 3C, Hd, head_dim tiles) 128-aligned.
    B, N, C = 2, 8, 128
    num_heads = 4
    mlp_ratio = 4.0
    Hd = int(C * mlp_ratio)

    key = jax.random.PRNGKey(0)
    keys = jax.random.split(key, 13)

    x = jax.random.normal(keys[0], (B, N, C), dtype=jnp.float32)
    # Deterministic synthetic parameters (not loaded from a checkpoint).
    params = {
        "ln1_g": 1.0 + 0.1 * jax.random.normal(keys[1], (C,), jnp.float32),
        "ln1_b": 0.1 * jax.random.normal(keys[2], (C,), jnp.float32),
        "w_qkv": 0.05 * jax.random.normal(keys[3], (C, 3 * C), jnp.float32),
        "b_qkv": 0.05 * jax.random.normal(keys[4], (3 * C,), jnp.float32),
        "w_proj": 0.05 * jax.random.normal(keys[5], (C, C), jnp.float32),
        "b_proj": 0.05 * jax.random.normal(keys[6], (C,), jnp.float32),
        "ln2_g": 1.0 + 0.1 * jax.random.normal(keys[7], (C,), jnp.float32),
        "ln2_b": 0.1 * jax.random.normal(keys[8], (C,), jnp.float32),
        "w_fc1": 0.05 * jax.random.normal(keys[9], (C, Hd), jnp.float32),
        "b_fc1": 0.05 * jax.random.normal(keys[10], (Hd,), jnp.float32),
        "w_fc2": 0.05 * jax.random.normal(keys[11], (Hd, C), jnp.float32),
        "b_fc2": 0.05 * jax.random.normal(keys[12], (C,), jnp.float32),
    }

    out = transformer_block_pallas(x, params, num_heads=num_heads)
    out = jax.block_until_ready(out)

    ref = transformer_block_reference(x, params, num_heads=num_heads)
    assert out.shape == (B, N, C)
    max_err = float(jnp.max(jnp.abs(out - ref)))
    # bf16 matmul operands + approx reciprocal -> tolerance looser than f32.
    assert jnp.allclose(out, ref, atol=2e-2, rtol=2e-2), \
        f"mismatch vs reference (max abs err {max_err})"

    print("KERNEL_OK")
</pallas_src>

<mosaic_0001>
module attributes {stable_mosaic.version = 11 : i64} {
  func.func @_block_kernel(%arg0: i32, %arg1: memref<8x128xf32, #tpu.memory_space<vmem>>, %arg2: memref<128x384xbf16, #tpu.memory_space<vmem>>, %arg3: memref<128x128xbf16, #tpu.memory_space<vmem>>, %arg4: memref<128x512xbf16, #tpu.memory_space<vmem>>, %arg5: memref<512x128xbf16, #tpu.memory_space<vmem>>, %arg6: memref<1x1664xf32, #tpu.memory_space<vmem>>, %arg7: memref<8x128xf32, #tpu.memory_space<vmem>>) attributes {dimension_semantics = [#tpu.dimension_semantics<parallel>], iteration_bounds = array<i64: 2>, scalar_prefetch = 0 : i64, scratch_operands = 0 : i64, tpu.core_type = #tpu.core_type<tc>, window_params = [{transform_indices = @transform_0, window_bounds = array<i64: 8, 128>}, {pipeline_mode = #tpu.pipeline_mode<synchronous>, transform_indices = @transform_1, window_bounds = array<i64: 128, 384>}, {pipeline_mode = #tpu.pipeline_mode<synchronous>, transform_indices = @transform_2, window_bounds = array<i64: 128, 128>}, {pipeline_mode = #tpu.pipeline_mode<synchronous>, transform_indices = @transform_3, window_bounds = array<i64: 128, 512>}, {pipeline_mode = #tpu.pipeline_mode<synchronous>, transform_indices = @transform_4, window_bounds = array<i64: 512, 128>}, {pipeline_mode = #tpu.pipeline_mode<synchronous>, transform_indices = @transform_5, window_bounds = array<i64: 1, 1664>}, {transform_indices = @transform_6, window_bounds = array<i64: 8, 128>}]} {
    %c0 = arith.constant 0 : index
    %c0_0 = arith.constant 0 : index
    %0 = vector.load %arg6[%c0, %c0_0] : memref<1x1664xf32, #tpu.memory_space<vmem>>, vector<1x128xf32>
    %1 = vector.shape_cast %0 : vector<1x128xf32> to vector<128xf32>
    %c0_1 = arith.constant 0 : index
    %c128 = arith.constant 128 : index
    %2 = vector.load %arg6[%c0_1, %c128] : memref<1x1664xf32, #tpu.memory_space<vmem>>, vector<1x128xf32>
    %3 = vector.shape_cast %2 : vector<1x128xf32> to vector<128xf32>
    %c0_2 = arith.constant 0 : index
    %c256 = arith.constant 256 : index
    %4 = vector.load %arg6[%c0_2, %c256] : memref<1x1664xf32, #tpu.memory_space<vmem>>, vector<1x128xf32>
    %5 = vector.shape_cast %4 : vector<1x128xf32> to vector<128xf32>
    %c0_3 = arith.constant 0 : index
    %c384 = arith.constant 384 : index
    %6 = vector.load %arg6[%c0_3, %c384] : memref<1x1664xf32, #tpu.memory_space<vmem>>, vector<1x128xf32>
    %7 = vector.shape_cast %6 : vector<1x128xf32> to vector<128xf32>
    %c0_4 = arith.constant 0 : index
    %c512 = arith.constant 512 : index
    %8 = vector.load %arg6[%c0_4, %c512] : memref<1x1664xf32, #tpu.memory_space<vmem>>, vector<1x384xf32>
    %9 = vector.shape_cast %8 : vector<1x384xf32> to vector<384xf32>
    %c0_5 = arith.constant 0 : index
    %c896 = arith.constant 896 : index
    %10 = vector.load %arg6[%c0_5, %c896] : memref<1x1664xf32, #tpu.memory_space<vmem>>, vector<1x128xf32>
    %11 = vector.shape_cast %10 : vector<1x128xf32> to vector<128xf32>
    %c0_6 = arith.constant 0 : index
    %c1024 = arith.constant 1024 : index
    %12 = vector.load %arg6[%c0_6, %c1024] : memref<1x1664xf32, #tpu.memory_space<vmem>>, vector<1x512xf32>
    %13 = vector.shape_cast %12 : vector<1x512xf32> to vector<512xf32>
    %c0_7 = arith.constant 0 : index
    %c1536 = arith.constant 1536 : index
    %14 = vector.load %arg6[%c0_7, %c1536] : memref<1x1664xf32, #tpu.memory_space<vmem>>, vector<1x128xf32>
    %15 = vector.shape_cast %14 : vector<1x128xf32> to vector<128xf32>
    %c0_8 = arith.constant 0 : index
    %c0_9 = arith.constant 0 : index
    %16 = vector.load %arg1[%c0_8, %c0_9] : memref<8x128xf32, #tpu.memory_space<vmem>>, vector<8x128xf32>
    %cst = arith.constant dense<0.000000e+00> : vector<8xf32>
    %17 = vector.multi_reduction <add>, %16, %cst [1] : vector<8x128xf32> to vector<8xf32>
    %18 = vector.shape_cast %17 : vector<8xf32> to vector<8x1xf32>
    %cst_10 = arith.constant 1.280000e+02 : f32
    %19 = vector.broadcast %cst_10 : f32 to vector<8x1xf32>
    %20 = arith.divf %18, %19 : vector<8x1xf32>
    %21 = vector.broadcast %20 : vector<8x1xf32> to vector<8x128xf32>
    %22 = arith.subf %16, %21 : vector<8x128xf32>
    %23 = arith.mulf %22, %22 : vector<8x128xf32>
    %cst_11 = arith.constant dense<0.000000e+00> : vector<8xf32>
    %24 = vector.multi_reduction <add>, %23, %cst_11 [1] : vector<8x128xf32> to vector<8xf32>
    %25 = vector.shape_cast %24 : vector<8xf32> to vector<8x1xf32>
    %cst_12 = arith.constant 1.280000e+02 : f32
    %26 = vector.broadcast %cst_12 : f32 to vector<8x1xf32>
    %27 = arith.divf %25, %26 : vector<8x1xf32>
    %28 = vector.broadcast %20 : vector<8x1xf32> to vector<8x128xf32>
    %29 = arith.subf %16, %28 : vector<8x128xf32>
    %cst_13 = arith.constant 9.99999974E-6 : f32
    %30 = vector.broadcast %cst_13 : f32 to vector<8x1xf32>
    %31 = arith.addf %27, %30 : vector<8x1xf32>
    %32 = math.rsqrt %31 : vector<8x1xf32>
    %33 = vector.broadcast %32 : vector<8x1xf32> to vector<8x128xf32>
    %34 = arith.mulf %29, %33 : vector<8x128xf32>
    %35 = vector.shape_cast %1 : vector<128xf32> to vector<1x128xf32>
    %36 = vector.broadcast %35 : vector<1x128xf32> to vector<8x128xf32>
    %37 = arith.mulf %34, %36 : vector<8x128xf32>
    %38 = vector.shape_cast %3 : vector<128xf32> to vector<1x128xf32>
    %39 = vector.broadcast %38 : vector<1x128xf32> to vector<8x128xf32>
    %40 = arith.addf %37, %39 : vector<8x128xf32>
    %41 = arith.truncf %40 : vector<8x128xf32> to vector<8x128xbf16>
    %c0_14 = arith.constant 0 : index
    %c0_15 = arith.constant 0 : index
    %42 = vector.load %arg2[%c0_14, %c0_15] : memref<128x384xbf16, #tpu.memory_space<vmem>>, vector<128x384xbf16>
    %cst_16 = arith.constant dense<0.000000e+00> : vector<8x384xf32>
    %43 = tpu.matmul %41, %42, %cst_16 {dimension_numbers = #tpu.dot_dimension_numbers<[1], [0], [0], [1], [0, 0, 1, 1], [], []>} : vector<8x128xbf16>, vector<128x384xbf16>, vector<8x384xf32> -> vector<8x384xf32>
    %44 = vector.shape_cast %9 : vector<384xf32> to vector<1x384xf32>
    %45 = vector.broadcast %44 : vector<1x384xf32> to vector<8x384xf32>
    %46 = arith.addf %43, %45 : vector<8x384xf32>
    %47 = arith.truncf %46 : vector<8x384xf32> to vector<8x384xbf16>
    %48 = vector.extract_strided_slice %47 {offsets = [0, 0], sizes = [8, 32], strides = [1, 1]} : vector<8x384xbf16> to vector<8x32xbf16>
    %49 = vector.extract_strided_slice %47 {offsets = [0, 128], sizes = [8, 32], strides = [1, 1]} : vector<8x384xbf16> to vector<8x32xbf16>
    %50 = vector.extract_strided_slice %47 {offsets = [0, 256], sizes = [8, 32], strides = [1, 1]} : vector<8x384xbf16> to vector<8x32xbf16>
    %cst_17 = arith.constant dense<0.000000e+00> : vector<8x8xf32>
    %51 = tpu.matmul %48, %49, %cst_17 {dimension_numbers = #tpu.dot_dimension_numbers<[1], [1], [0], [0], [0, 0, 1, 0], [], []>} : vector<8x32xbf16>, vector<8x32xbf16>, vector<8x8xf32> -> vector<8x8xf32>
    %cst_18 = arith.constant 0.176776692 : f32
    %52 = vector.broadcast %cst_18 : f32 to vector<8x8xf32>
    %53 = arith.mulf %51, %52 : vector<8x8xf32>
    %cst_19 = arith.constant dense<0xFF800000> : vector<8xf32>
    %54 = vector.multi_reduction <maximumf>, %53, %cst_19 [1] : vector<8x8xf32> to vector<8xf32>
    %55 = vector.shape_cast %54 : vector<8xf32> to vector<8x1xf32>
    %56 = vector.broadcast %55 : vector<8x1xf32> to vector<8x8xf32>
    %57 = arith.subf %53, %56 : vector<8x8xf32>
    %58 = math.exp %57 : vector<8x8xf32>
    %cst_20 = arith.constant dense<0.000000e+00> : vector<8xf32>
    %59 = vector.multi_reduction <add>, %58, %cst_20 [1] : vector<8x8xf32> to vector<8xf32>
    %60 = vector.shape_cast %59 : vector<8xf32> to vector<8x1xf32>
    %61 = tpu.reciprocal %60 {approx = true} : vector<8x1xf32> -> vector<8x1xf32>
    %62 = vector.broadcast %61 : vector<8x1xf32> to vector<8x8xf32>
    %63 = arith.mulf %58, %62 : vector<8x8xf32>
    %64 = arith.truncf %63 : vector<8x8xf32> to vector<8x8xbf16>
    %cst_21 = arith.constant dense<0.000000e+00> : vector<8x32xf32>
    %65 = tpu.matmul %64, %50, %cst_21 {dimension_numbers = #tpu.dot_dimension_numbers<[1], [0], [0], [1], [0, 0, 1, 1], [], []>} : vector<8x8xbf16>, vector<8x32xbf16>, vector<8x32xf32> -> vector<8x32xf32>
    %66 = vector.extract_strided_slice %47 {offsets = [0, 32], sizes = [8, 32], strides = [1, 1]} : vector<8x384xbf16> to vector<8x32xbf16>
    %67 = vector.extract_strided_slice %47 {offsets = [0, 160], sizes = [8, 32], strides = [1, 1]} : vector<8x384xbf16> to vector<8x32xbf16>
    %68 = vector.extract_strided_slice %47 {offsets = [0, 288], sizes = [8, 32], strides = [1, 1]} : vector<8x384xbf16> to vector<8x32xbf16>
    %cst_22 = arith.constant dense<0.000000e+00> : vector<8x8xf32>
    %69 = tpu.matmul %66, %67, %cst_22 {dimension_numbers = #tpu.dot_dimension_numbers<[1], [1], [0], [0], [0, 0, 1, 0], [], []>} : vector<8x32xbf16>, vector<8x32xbf16>, vector<8x8xf32> -> vector<8x8xf32>
    %cst_23 = arith.constant 0.176776692 : f32
    %70 = vector.broadcast %cst_23 : f32 to vector<8x8xf32>
    %71 = arith.mulf %69, %70 : vector<8x8xf32>
    %cst_24 = arith.constant dense<0xFF800000> : vector<8xf32>
    %72 = vector.multi_reduction <maximumf>, %71, %cst_24 [1] : vector<8x8xf32> to vector<8xf32>
    %73 = vector.shape_cast %72 : vector<8xf32> to vector<8x1xf32>
    %74 = vector.broadcast %73 : vector<8x1xf32> to vector<8x8xf32>
    %75 = arith.subf %71, %74 : vector<8x8xf32>
    %76 = math.exp %75 : vector<8x8xf32>
    %cst_25 = arith.constant dense<0.000000e+00> : vector<8xf32>
    %77 = vector.multi_reduction <add>, %76, %cst_25 [1] : vector<8x8xf32> to vector<8xf32>
    %78 = vector.shape_cast %77 : vector<8xf32> to vector<8x1xf32>
    %79 = tpu.reciprocal %78 {approx = true} : vector<8x1xf32> -> vector<8x1xf32>
    %80 = vector.broadcast %79 : vector<8x1xf32> to vector<8x8xf32>
    %81 = arith.mulf %76, %80 : vector<8x8xf32>
    %82 = arith.truncf %81 : vector<8x8xf32> to vector<8x8xbf16>
    %cst_26 = arith.constant dense<0.000000e+00> : vector<8x32xf32>
    %83 = tpu.matmul %82, %68, %cst_26 {dimension_numbers = #tpu.dot_dimension_numbers<[1], [0], [0], [1], [0, 0, 1, 1], [], []>} : vector<8x8xbf16>, vector<8x32xbf16>, vector<8x32xf32> -> vector<8x32xf32>
    %84 = vector.extract_strided_slice %47 {offsets = [0, 64], sizes = [8, 32], strides = [1, 1]} : vector<8x384xbf16> to vector<8x32xbf16>
    %85 = vector.extract_strided_slice %47 {offsets = [0, 192], sizes = [8, 32], strides = [1, 1]} : vector<8x384xbf16> to vector<8x32xbf16>
    %86 = vector.extract_strided_slice %47 {offsets = [0, 320], sizes = [8, 32], strides = [1, 1]} : vector<8x384xbf16> to vector<8x32xbf16>
    %cst_27 = arith.constant dense<0.000000e+00> : vector<8x8xf32>
    %87 = tpu.matmul %84, %85, %cst_27 {dimension_numbers = #tpu.dot_dimension_numbers<[1], [1], [0], [0], [0, 0, 1, 0], [], []>} : vector<8x32xbf16>, vector<8x32xbf16>, vector<8x8xf32> -> vector<8x8xf32>
    %cst_28 = arith.constant 0.176776692 : f32
    %88 = vector.broadcast %cst_28 : f32 to vector<8x8xf32>
    %89 = arith.mulf %87, %88 : vector<8x8xf32>
    %cst_29 = arith.constant dense<0xFF800000> : vector<8xf32>
    %90 = vector.multi_reduction <maximumf>, %89, %cst_29 [1] : vector<8x8xf32> to vector<8xf32>
    %91 = vector.shape_cast %90 : vector<8xf32> to vector<8x1xf32>
    %92 = vector.broadcast %91 : vector<8x1xf32> to vector<8x8xf32>
    %93 = arith.subf %89, %92 : vector<8x8xf32>
    %94 = math.exp %93 : vector<8x8xf32>
    %cst_30 = arith.constant dense<0.000000e+00> : vector<8xf32>
    %95 = vector.multi_reduction <add>, %94, %cst_30 [1] : vector<8x8xf32> to vector<8xf32>
    %96 = vector.shape_cast %95 : vector<8xf32> to vector<8x1xf32>
    %97 = tpu.reciprocal %96 {approx = true} : vector<8x1xf32> -> vector<8x1xf32>
    %98 = vector.broadcast %97 : vector<8x1xf32> to vector<8x8xf32>
    %99 = arith.mulf %94, %98 : vector<8x8xf32>
    %100 = arith.truncf %99 : vector<8x8xf32> to vector<8x8xbf16>
    %cst_31 = arith.constant dense<0.000000e+00> : vector<8x32xf32>
    %101 = tpu.matmul %100, %86, %cst_31 {dimension_numbers = #tpu.dot_dimension_numbers<[1], [0], [0], [1], [0, 0, 1, 1], [], []>} : vector<8x8xbf16>, vector<8x32xbf16>, vector<8x32xf32> -> vector<8x32xf32>
    %102 = vector.extract_strided_slice %47 {offsets = [0, 96], sizes = [8, 32], strides = [1, 1]} : vector<8x384xbf16> to vector<8x32xbf16>
    %103 = vector.extract_strided_slice %47 {offsets = [0, 224], sizes = [8, 32], strides = [1, 1]} : vector<8x384xbf16> to vector<8x32xbf16>
    %104 = vector.extract_strided_slice %47 {offsets = [0, 352], sizes = [8, 32], strides = [1, 1]} : vector<8x384xbf16> to vector<8x32xbf16>
    %cst_32 = arith.constant dense<0.000000e+00> : vector<8x8xf32>
    %105 = tpu.matmul %102, %103, %cst_32 {dimension_numbers = #tpu.dot_dimension_numbers<[1], [1], [0], [0], [0, 0, 1, 0], [], []>} : vector<8x32xbf16>, vector<8x32xbf16>, vector<8x8xf32> -> vector<8x8xf32>
    %cst_33 = arith.constant 0.176776692 : f32
    %106 = vector.broadcast %cst_33 : f32 to vector<8x8xf32>
    %107 = arith.mulf %105, %106 : vector<8x8xf32>
    %cst_34 = arith.constant dense<0xFF800000> : vector<8xf32>
    %108 = vector.multi_reduction <maximumf>, %107, %cst_34 [1] : vector<8x8xf32> to vector<8xf32>
    %109 = vector.shape_cast %108 : vector<8xf32> to vector<8x1xf32>
    %110 = vector.broadcast %109 : vector<8x1xf32> to vector<8x8xf32>
    %111 = arith.subf %107, %110 : vector<8x8xf32>
    %112 = math.exp %111 : vector<8x8xf32>
    %cst_35 = arith.constant dense<0.000000e+00> : vector<8xf32>
    %113 = vector.multi_reduction <add>, %112, %cst_35 [1] : vector<8x8xf32> to vector<8xf32>
    %114 = vector.shape_cast %113 : vector<8xf32> to vector<8x1xf32>
    %115 = tpu.reciprocal %114 {approx = true} : vector<8x1xf32> -> vector<8x1xf32>
    %116 = vector.broadcast %115 : vector<8x1xf32> to vector<8x8xf32>
    %117 = arith.mulf %112, %116 : vector<8x8xf32>
    %118 = arith.truncf %117 : vector<8x8xf32> to vector<8x8xbf16>
    %cst_36 = arith.constant dense<0.000000e+00> : vector<8x32xf32>
    %119 = tpu.matmul %118, %104, %cst_36 {dimension_numbers = #tpu.dot_dimension_numbers<[1], [0], [0], [1], [0, 0, 1, 1], [], []>} : vector<8x8xbf16>, vector<8x32xbf16>, vector<8x32xf32> -> vector<8x32xf32>
    %120 = tpu.concatenate %65, %83, %101, %119 in 1 : vector<8x32xf32>, vector<8x32xf32>, vector<8x32xf32>, vector<8x32xf32> -> vector<8x128xf32>
    %121 = arith.truncf %120 : vector<8x128xf32> to vector<8x128xbf16>
    %c0_37 = arith.constant 0 : index
    %c0_38 = arith.constant 0 : index
    %122 = vector.load %arg3[%c0_37, %c0_38] : memref<128x128xbf16, #tpu.memory_space<vmem>>, vector<128x128xbf16>
    %cst_39 = arith.constant dense<0.000000e+00> : vector<8x128xf32>
    %123 = tpu.matmul %121, %122, %cst_39 {dimension_numbers = #tpu.dot_dimension_numbers<[1], [0], [0], [1], [0, 0, 1, 1], [], []>} : vector<8x128xbf16>, vector<128x128xbf16>, vector<8x128xf32> -> vector<8x128xf32>
    %124 = vector.shape_cast %11 : vector<128xf32> to vector<1x128xf32>
    %125 = vector.broadcast %124 : vector<1x128xf32> to vector<8x128xf32>
    %126 = arith.addf %123, %125 : vector<8x128xf32>
    %127 = arith.addf %16, %126 : vector<8x128xf32>
    %cst_40 = arith.constant dense<0.000000e+00> : vector<8xf32>
    %128 = vector.multi_reduction <add>, %127, %cst_40 [1] : vector<8x128xf32> to vector<8xf32>
    %129 = vector.shape_cast %128 : vector<8xf32> to vector<8x1xf32>
    %cst_41 = arith.constant 1.280000e+02 : f32
    %130 = vector.broadcast %cst_41 : f32 to vector<8x1xf32>
    %131 = arith.divf %129, %130 : vector<8x1xf32>
    %132 = vector.broadcast %131 : vector<8x1xf32> to vector<8x128xf32>
    %133 = arith.subf %127, %132 : vector<8x128xf32>
    %134 = arith.mulf %133, %133 : vector<8x128xf32>
    %cst_42 = arith.constant dense<0.000000e+00> : vector<8xf32>
    %135 = vector.multi_reduction <add>, %134, %cst_42 [1] : vector<8x128xf32> to vector<8xf32>
    %136 = vector.shape_cast %135 : vector<8xf32> to vector<8x1xf32>
    %cst_43 = arith.constant 1.280000e+02 : f32
    %137 = vector.broadcast %cst_43 : f32 to vector<8x1xf32>
    %138 = arith.divf %136, %137 : vector<8x1xf32>
    %139 = vector.broadcast %131 : vector<8x1xf32> to vector<8x128xf32>
    %140 = arith.subf %127, %139 : vector<8x128xf32>
    %cst_44 = arith.constant 9.99999974E-6 : f32
    %141 = vector.broadcast %cst_44 : f32 to vector<8x1xf32>
    %142 = arith.addf %138, %141 : vector<8x1xf32>
    %143 = math.rsqrt %142 : vector<8x1xf32>
    %144 = vector.broadcast %143 : vector<8x1xf32> to vector<8x128xf32>
    %145 = arith.mulf %140, %144 : vector<8x128xf32>
    %146 = vector.shape_cast %5 : vector<128xf32> to vector<1x128xf32>
    %147 = vector.broadcast %146 : vector<1x128xf32> to vector<8x128xf32>
    %148 = arith.mulf %145, %147 : vector<8x128xf32>
    %149 = vector.shape_cast %7 : vector<128xf32> to vector<1x128xf32>
    %150 = vector.broadcast %149 : vector<1x128xf32> to vector<8x128xf32>
    %151 = arith.addf %148, %150 : vector<8x128xf32>
    %152 = arith.truncf %151 : vector<8x128xf32> to vector<8x128xbf16>
    %c0_45 = arith.constant 0 : index
    %c0_46 = arith.constant 0 : index
    %153 = vector.load %arg4[%c0_45, %c0_46] : memref<128x512xbf16, #tpu.memory_space<vmem>>, vector<128x512xbf16>
    %cst_47 = arith.constant dense<0.000000e+00> : vector<8x512xf32>
    %154 = tpu.matmul %152, %153, %cst_47 {dimension_numbers = #tpu.dot_dimension_numbers<[1], [0], [0], [1], [0, 0, 1, 1], [], []>} : vector<8x128xbf16>, vector<128x512xbf16>, vector<8x512xf32> -> vector<8x512xf32>
    %155 = vector.shape_cast %13 : vector<512xf32> to vector<1x512xf32>
    %156 = vector.broadcast %155 : vector<1x512xf32> to vector<8x512xf32>
    %157 = arith.addf %154, %156 : vector<8x512xf32>
    %cst_48 = arith.constant 5.000000e-01 : f32
    %158 = vector.broadcast %cst_48 : f32 to vector<8x512xf32>
    %159 = arith.mulf %158, %157 : vector<8x512xf32>
    %160 = arith.mulf %157, %157 : vector<8x512xf32>
    %161 = arith.mulf %160, %157 : vector<8x512xf32>
    %cst_49 = arith.constant 4.471500e-02 : f32
    %162 = vector.broadcast %cst_49 : f32 to vector<8x512xf32>
    %163 = arith.mulf %162, %161 : vector<8x512xf32>
    %164 = arith.addf %157, %163 : vector<8x512xf32>
    %cst_50 = arith.constant 0.797884583 : f32
    %165 = vector.broadcast %cst_50 : f32 to vector<8x512xf32>
    %166 = arith.mulf %165, %164 : vector<8x512xf32>
    %167 = math.tanh %166 : vector<8x512xf32>
    %cst_51 = arith.constant 1.000000e+00 : f32
    %168 = vector.broadcast %cst_51 : f32 to vector<8x512xf32>
    %169 = arith.addf %168, %167 : vector<8x512xf32>
    %170 = arith.mulf %159, %169 : vector<8x512xf32>
    %171 = arith.truncf %170 : vector<8x512xf32> to vector<8x512xbf16>
    %c0_52 = arith.constant 0 : index
    %c0_53 = arith.constant 0 : index
    %172 = vector.load %arg5[%c0_52, %c0_53] : memref<512x128xbf16, #tpu.memory_space<vmem>>, vector<512x128xbf16>
    %cst_54 = arith.constant dense<0.000000e+00> : vector<8x128xf32>
    %173 = tpu.matmul %171, %172, %cst_54 {dimension_numbers = #tpu.dot_dimension_numbers<[1], [0], [0], [1], [0, 0, 1, 1], [], []>} : vector<8x512xbf16>, vector<512x128xbf16>, vector<8x128xf32> -> vector<8x128xf32>
    %174 = vector.shape_cast %15 : vector<128xf32> to vector<1x128xf32>
    %175 = vector.broadcast %174 : vector<1x128xf32> to vector<8x128xf32>
    %176 = arith.addf %173, %175 : vector<8x128xf32>
    %177 = arith.addf %127, %176 : vector<8x128xf32>
    %c0_55 = arith.constant 0 : index
    %c0_56 = arith.constant 0 : index
    %178 = vector.load %arg7[%c0_55, %c0_56] : memref<8x128xf32, #tpu.memory_space<vmem>>, vector<8x128xf32>
    tpu.vector_store %arg7[%c0_55, %c0_56], %177 {strides = array<i32>} : memref<8x128xf32, #tpu.memory_space<vmem>>, vector<8x128xf32>,
    return
  }
  func.func @transform_0(%arg0: i32) -> (i32, i32) {
    %c0_i32 = arith.constant 0 : i32
    %c0_i32_0 = arith.constant 0 : i32
    return %arg0, %c0_i32 : i32, i32
  }
  func.func @transform_1(%arg0: i32) -> (i32, i32) {
    %c0_i32 = arith.constant 0 : i32
    %c0_i32_0 = arith.constant 0 : i32
    %c0_i32_1 = arith.constant 0 : i32
    return %c0_i32, %c0_i32_0 : i32, i32
  }
  func.func @transform_2(%arg0: i32) -> (i32, i32) {
    %c0_i32 = arith.constant 0 : i32
    %c0_i32_0 = arith.constant 0 : i32
    %c0_i32_1 = arith.constant 0 : i32
    return %c0_i32, %c0_i32_0 : i32, i32
  }
  func.func @transform_3(%arg0: i32) -> (i32, i32) {
    %c0_i32 = arith.constant 0 : i32
    %c0_i32_0 = arith.constant 0 : i32
    %c0_i32_1 = arith.constant 0 : i32
    return %c0_i32, %c0_i32_0 : i32, i32
  }
  func.func @transform_4(%arg0: i32) -> (i32, i32) {
    %c0_i32 = arith.constant 0 : i32
    %c0_i32_0 = arith.constant 0 : i32
    %c0_i32_1 = arith.constant 0 : i32
    return %c0_i32, %c0_i32_0 : i32, i32
  }
  func.func @transform_5(%arg0: i32) -> (i32, i32) {
    %c0_i32 = arith.constant 0 : i32
    %c0_i32_0 = arith.constant 0 : i32
    %c0_i32_1 = arith.constant 0 : i32
    return %c0_i32, %c0_i32_0 : i32, i32
  }
  func.func @transform_6(%arg0: i32) -> (i32, i32) {
    %c0_i32 = arith.constant 0 : i32
    %c0_i32_0 = arith.constant 0 : i32
    return %arg0, %c0_i32 : i32, i32
  }
}

</mosaic_0001>

<bundles_post_ra>
// kernel: tpu_custom_call.1
= control target key start
LH: loop header
LB: loop body
LE: loop exit
PB: predicated region body
PF: predicated region fallthrough
CT: control target
= control target key end

     0   :  { %s3219_s0 = inlined_call_operand.hbm [shape: f32[16,128], index: 0, kind: input, shape index: {}]   ;;  %s3220_s1 = inlined_call_operand.hbm [shape: bf16[128,384], index: 1, kind: input, shape index: {}]   ;;  %s3221_s2 = inlined_call_operand.hbm [shape: bf16[128,128], index: 2, kind: input, shape index: {}]   ;;  %s3222_s3 = inlined_call_operand.hbm [shape: bf16[128,512], index: 3, kind: input, shape index: {}]   ;;  %s3223_s4 = inlined_call_operand.hbm [shape: bf16[512,128], index: 4, kind: input, shape index: {}]   ;;  %s3224_s5 = inlined_call_operand.hbm [shape: f32[1,1664], index: 5, kind: input, shape index: {}]   ;;  %s3225_s6 = inlined_call_operand.hbm [shape: f32[16,128], index: 6, kind: output, shape index: {}]  }
   0x1   :  { %3230 = sst [smem:[#allocation19_spill]] %s3220_s1 }
   0x2   :  { %11 = vsyncpa [#allocation3], 0 }
   0x3   :  { %13 = vsyncpa [#allocation3 + $0x1], 0 }
   0x4   :  { %14 = vsyncpa [#allocation6], 0 }
   0x5   :  { %15 = vsyncpa [#allocation9], 0 }
   0x6   :  { %16 = vsyncpa [#allocation12], 0 }
   0x7   :  { %17 = vsyncpa [#allocation4], 0 }
   0x8   :  { %19 = vsyncpa [#allocation4 + $0x1], 0  ;;  %s2890_s21 = smov 0   ;;  %s2892_s22 = smov 0  }
   0x9   :  { %s2894_s23 = smov 0   ;;  %s2896_s24 = smov 0  }
   0xa LB: > { %s2836_s25 = smov [#allocation5]   ;;  %s2911_s27 = sadd.s32 4294967295, %s2834_s24   ;;  %s2834_s24 = sphi %s2896_s24, %s3254_s24   ;;  %s2830_s23 = sphi %s2894_s23, %s3253_s23   ;;  %s2826_s22 = sphi %s2892_s22, %s3252_s22   ;;  %s2822_s21 = sphi %s2890_s21, %s3251_s21  }
   0xb   : > { %s199_s26 = sshll.u32 %s2836_s25, 4  ;;  %p2046_p0 = scmp.ge.s32.totalorder %s2834_s24, 1  ;;  %s200_s26 = int_to_ptr.vmem [resolvable:$true] %s199_s26 }
   0xc   : > { %p3226_p1 = scmp.eq.s32.totalorder %s2911_s27, 0  ;;  %p187_p2 = scmp.lt.s32.totalorder %s2834_s24, 3 }
   0xd   : > { %s2837_s29 = smov [#allocation8]   ;;  %s2838_s8 = smov [#allocation7]  }
   0xe   : > { %p2916_p3 = pnand %p2046_p0, %p187_p2  ;;  %s225_s30 = sshll.u32 %s2837_s29, 4  ;;  %s2929_s30 = int_to_ptr.vmem [resolvable:$true] %s225_s30 }
   0xf   : > { %s2931_s9 = sshll.u32 %s2838_s8, 4  ;;  %s2611_s11 = scalar_lea.vmem %s200_s26, 3072  ;;  %s213_s9 = int_to_ptr.vmem [resolvable:$true] %s2931_s9 }
  0x10   : > { %s3231_s28 = scalar_select %p2916_p3, 1, 0 }
  0x11   : > { %p2367_p5 = pneg %p2916_p3  ;;  %p2612_p8 = scmp.ne.s32.totalorder %s200_s26, %s2611_s11 }
  0x12   : > { %p2619_p11 = scmp.lt.s32.totalorder %s200_s26, %s200_s26  ;;  %p2620_p12 = scmp.lt.s32.totalorder %s2611_s11, %s2611_s11 }
  0x13   : > { %p2925_p6 = pnand %p2367_p5, %p3226_p1 }
  0x14   : > { %p2621_p13 = por %p2620_p12, %p2619_p11 }
  0x15   : > { %p2935_p7 = pneg %p2925_p6 }
  0x17   : > { %p2614_p9 = pnand %p2612_p8, %p2935_p7 }
  0x19   : > { %p2615_p10 = pneg %p2614_p9 }
  0x1b   : > { %p2622_p0 = pnand %p2621_p13, %p2615_p10 }
  0x1d   : > { %2625 = shalt.err (!%p2622_p0)
}
  0x1e   : > { %s2839_s12 = smov 192   ;;  %s2840_s13 = smov 12  }
  0x1f   : > { %s3234_s1 = sld [smem:[#allocation19_spill]]  ;;  %s2637_s16 = scalar_lea.vmem %s2929_s30, 4096 }
  0x20   : > { %p2638_p2 = scmp.ne.s32.totalorder %s2929_s30, %s2637_s16  ;;  %p2645_p9 = scmp.lt.s32.totalorder %s2929_s30, %s2929_s30 }
  0x21   : > { %p2646_p10 = scmp.lt.s32.totalorder %s2637_s16, %s2637_s16 }
  0x22   : > { %p2640_p5 = pnand %p2638_p2, %p2935_p7 }
  0x23   : > { %p2647_p11 = por %p2646_p10, %p2645_p9 }
  0x24   : > { %p2641_p8 = pneg %p2640_p5 }
  0x25   : > { %2370 = dma.hbm_to_vmem [thread:$0]  (!%p2925_p6), %s3234_s1, 3072, %s200_s26, [#allocation6], %s2839_s12, %s2839_s12, %s2840_s13  }
  0x26   : > { %p2648_p12 = pnand %p2647_p11, %p2641_p8 }
  0x28   : > { %2651 = shalt.err (!%p2648_p12)
}
  0x29   : > { %s2841_s17 = smov 256   ;;  %s2842_s18 = smov 16  }
  0x2a   : > { %2376 = dma.hbm_to_vmem [thread:$0]  (!%p2925_p6), %s3222_s3, 4096, %s2929_s30, [#allocation9], %s2841_s17, %s2841_s17, %s2842_s18  }
  0x2b   : > { %s2663_s25 = scalar_lea.vmem %s213_s9, 1024  ;;  %p2671_p5 = scmp.lt.s32.totalorder %s213_s9, %s213_s9 }
  0x2c   : > { %p2664_p13 = scmp.ne.s32.totalorder %s213_s9, %s2663_s25  ;;  %p2672_p8 = scmp.lt.s32.totalorder %s2663_s25, %s2663_s25 }
  0x2e   : > { %p2666_p0 = pnand %p2664_p13, %p2935_p7  ;;  %p2673_p9 = por %p2672_p8, %p2671_p5 }
  0x30   : > { %p2667_p2 = pneg %p2666_p0 }
  0x32   : > { %p2674_p10 = pnand %p2673_p9, %p2667_p2 }
  0x34   : > { %2677 = shalt.err (!%p2674_p10)
}
  0x35   : > { %s2843_s26 = smov 64   ;;  %s2844_s29 = smov 4  }
  0x36   : > { %2373 = dma.hbm_to_vmem [thread:$0]  (!%p2925_p6), %s3221_s2, 1024, %s213_s9, [#allocation6], %s2843_s26, %s2843_s26, %s2844_s29  }
  0x37   : > { %s2845_s30 = smov [#allocation10]   ;;  %s2846_s13 = smov [#allocation11]  }
  0x38   : > { %s238_s12 = sshll.u32 %s2845_s30, 4  ;;  %s252_s14 = sshll.u32 %s2846_s13, 4  ;;  %s239_s12 = int_to_ptr.vmem [resolvable:$true] %s238_s12  ;;  %s253_s14 = int_to_ptr.vmem [resolvable:$true] %s252_s14 }
  0x39   : > { %s2689_s15 = scalar_lea.vmem %s239_s12, 4096  ;;  %p2697_p0 = scmp.lt.s32.totalorder %s239_s12, %s239_s12 }
  0x3a   : > { %p2690_p11 = scmp.ne.s32.totalorder %s239_s12, %s2689_s15  ;;  %p2698_p2 = scmp.lt.s32.totalorder %s2689_s15, %s2689_s15 }
  0x3c   : > { %p2692_p12 = pnand %p2690_p11, %p2935_p7  ;;  %p2699_p5 = por %p2698_p2, %p2697_p0 }
  0x3e   : > { %p2693_p13 = pneg %p2692_p12 }
  0x40   : > { %p2700_p8 = pnand %p2699_p5, %p2693_p13 }
  0x42   : > { %2703 = shalt.err (!%p2700_p8)
}
  0x43   : > { %2379 = dma.hbm_to_vmem [thread:$0]  (!%p2925_p6), %s3223_s4, 4096, %s239_s12, [#allocation9], %s2843_s26, %s2843_s26, %s2844_s29  }
  0x44   : > { %s2715_s9 = scalar_lea.vmem %s253_s14, 208  ;;  %s2722_s18 = scalar_lea.vmem %s253_s14, 224 }
  0x45   : > { %p2716_p9 = scmp.ne.s32.totalorder %s253_s14, %s2715_s9  ;;  %p2723_p11 = scmp.lt.s32.totalorder %s253_s14, %s253_s14 }
  0x46   : > { %p2724_p12 = scmp.lt.s32.totalorder %s2722_s18, %s2715_s9 }
  0x47   : > { %p2718_p10 = pnand %p2716_p9, %p2935_p7 }
  0x48   : > { %p2725_p1 = por %p2724_p12, %p2723_p11 }
  0x49   : > { %p2719_p4 = pneg %p2718_p10 }
  0x4b   : > { %p2726_p0 = pnand %p2725_p1, %p2719_p4 }
  0x4d   : > { %2729 = shalt.err (!%p2726_p0)
}
  0x4e   : > { %2382 = dma.hbm_to_vmem [thread:$0]  (!%p2925_p6), %s3224_s5, 208, %s253_s14, [#allocation12]  }
  0x4f   : > { %s2045_s10 = sadd.s32 4294967294, %s2834_s24   ;;  %s2982_s7 = sadd.s32 1, %s2834_s24  }
  0x50   : > { %s32_s25 = sadd.s32 1, %s2830_s23  ;;  %s29_s26 = ssub.s32 %s2834_s24, %s2982_s7 }
  0x51   : > { %p39_p1 = scmp.ne.s32.totalorder %s2830_s23, %s2826_s22  ;;  %p30_p4 = scmp.eq.s32.totalorder %s29_s26, 0 }
  0x52   : > { %p40_p7 = scmp.eq.s32.totalorder %s2834_s24, 0  ;;  %p45_p13 = scmp.ne.s32.totalorder %s2826_s22, %s2822_s21 }
  0x53   : > { %p174_p2 = scmp.eq.s32.totalorder %s2911_s27, 1  ;;  %p3235_p8 = scmp.eq.s32.totalorder %s2911_s27, 0 }
  0x54   : > { %s2994_s29 = scalar_select %p30_p4, %s2830_s23, %s32_s25  }
  0x55   : > { %p41_p5 = por %p40_p7, %p39_p1  ;;  %p2998_p9 = por %p3235_p8, %p45_p13 }
  0x56   : > { %p3002_p6 = por %p174_p2, %p39_p1  ;;  %p180_p10 = scmp.eq.s32.totalorder %s2045_s10, 1 }
  0x57   : > { %s3236_s8 = scalar_select %p2998_p9, 1, 0 }
  0x58   : > { %s3237_s11 = scalar_select %p3002_p6, 1, 0 }
  0x59   : > { %p2396_p11 = scmp.lt.s32.totalorder %s2834_s24, 2  ;;  %s263_s30 = sand.u32 1, %s2830_s23  }
  0x5a   : > { %p3008_p12 = por %p180_p10, %p45_p13  ;;  %s2053_s13 = sshll.u32 %s263_s30, 3 }
  0x5b   : > { %s2054_s14 = sshll.u32 %s2834_s24, 7  ;;  %s267_s9 = scalar_lea.vmem [#allocation2], %s2053_s13 }
  0x5c   : > { %s3238_s12 = scalar_select %p3008_p12, 1, 0 }
  0x5d   : > { %s3016_s17 = scalar_lea.hbm %s3219_s0, %s2054_s14  ;;  %s274_s18 = sshll.u32 %s267_s9, 4  ;;  %s275_s18 = int_to_ptr.vmem [resolvable:$true] %s274_s18 }
  0x5e   : > { %p3018_p0 = pnand %p2396_p11, %p41_p5  ;;  %s264_s20 = scalar_lea.sflag [#allocation3], %s263_s30 }
  0x5f   : > { %s2730_s10 = scalar_lea.hbm %s3016_s17, 128  ;;  %s2735_s14 = scalar_lea.hbm %s3219_s0, 256 }
  0x60   : > { %p2731_p1 = scmp.ne.s32.totalorder %s3016_s17, %s2730_s10  ;;  %p2732_p4 = pneg %p3018_p0 }
  0x61   : > { %p2736_p2 = scmp.lt.s32.totalorder %s3016_s17, %s3219_s0  ;;  %p2737_p5 = scmp.lt.s32.totalorder %s2735_s14, %s2730_s10 }
  0x62   : > { %p2733_p7 = pnand %p2732_p4, %p2731_p1 }
  0x63   : > { %p2738_p8 = por %p2737_p5, %p2736_p2 }
  0x64   : > { %p2734_p13 = pneg %p2733_p7 }
  0x66   : > { %p2739_p10 = pnand %p2738_p8, %p2734_p13 }
  0x68   : > { %2742 = shalt.err (!%p2739_p10)
}
  0x69   : > { %s2743_s16 = scalar_lea.vmem %s275_s18, 128  ;;  %s2847_s30 = smov [#allocation2]  }
  0x6a   : > { %p2744_p11 = scmp.ne.s32.totalorder %s275_s18, %s2743_s16  ;;  %s2748_s9 = sshll.u32 %s2847_s30, 4  ;;  %s2749_s9 = int_to_ptr.vmem [resolvable:$false] %s2748_s9 }
  0x6b   : > { %s2750_s1 = scalar_lea.vmem %s2749_s9, 256  ;;  %p2751_p1 = scmp.lt.s32.totalorder %s275_s18, %s2749_s9 }
  0x6c   : > { %p2746_p12 = pnand %p2744_p11, %p2732_p4  ;;  %p2752_p7 = scmp.lt.s32.totalorder %s2750_s1, %s2743_s16 }
  0x6e   : > { %p2747_p6 = pneg %p2746_p12  ;;  %p2753_p9 = por %p2752_p7, %p2751_p1 }
  0x70   : > { %p2754_p3 = pnand %p2753_p9, %p2747_p6 }
  0x72   : > { %2757 = shalt.err (!%p2754_p3)
}
  0x73   : > { %2386 = dma.hbm_to_vmem [thread:$0]  (!%p3018_p0), %s3016_s17, 128, %s275_s18, %s264_s20  }
  0x74   : > { %p3240_p13 = scmp.ne.s32.totalorder %s3231_s28, 0 }
  0x75   : > { %s3039_s10 = sand.u32 (!%p3240_p13), 1, %s2826_s22   ;;  %p3241_p9 = scmp.ne.s32.totalorder (!%p3240_p13), %s3236_s8, 0 }
  0x76   : > { %283 = sbr.rel (%p3240_p13) target bundleno = 2952 (0xb88), region = 44  ;;  %s2056_s25 = sshll.u32 (!%p3240_p13), %s3039_s10, 3 }
  0x77   : > { %s286_s26 = scalar_lea.sflag (!%p3240_p13), [#allocation3], %s3039_s10  ;;  %s289_s1 = scalar_lea.vmem (!%p3240_p13), [#allocation2], %s2056_s25 }
  0x7b   : > { %2801 = dma.done.wait (%p3241_p9), %s286_s26, 128  }
  0x7c   : > { %2803 = vsyncadd (%p3241_p9), %s286_s26, 4294967168  ;;  %p3242_p3 = scmp.eq.s32.totalorder %s2911_s27, 0 }
  0x7e   : > { %2805 = dma.done.wait (%p3242_p3), [#allocation6], 4096   ;;  %p3243_p6 = pmov %p3242_p3 }
  0x7f   : > { %p3244_p12 = pmov %p3242_p3 }
  0x80   : > { %2807 = vsyncadd (%p3243_p6), [#allocation6], 4294963200 }
  0x81   : > { %2809 = dma.done.wait (%p3244_p12), [#allocation9], 8192   ;;  %p3245_p0 = pmov %p3242_p3 }
  0x83   : > { %2811 = vsyncadd (%p3245_p0), [#allocation9], 4294959104  ;;  %p3246_p4 = pmov %p3245_p0 }
  0x84   : > { %p3247_p2 = pmov %p3245_p0 }
  0x85   : > { %2813 = dma.done.wait (%p3246_p4), [#allocation12], 208  }
  0x86   : > { %2815 = vsyncadd (%p3247_p2), [#allocation12], 4294967088  ;;  %v3061_v0 = vld [vmem:[%s289_s1] sm:$0xff]  ;;  %v2848_v3 = vmov 0.0   ;;  %v2463_v14 = vld [vmem:[#allocation5 + $0x80] ss:$12 sps:$4 sm:$0xff]   ;;  %v408_v41 = vlaneseq }
  0x87   : > { %348 = vadd.xlane.f32.xlu0 %v3061_v0  ;;  %v2452_v1 = vld [vmem:[#allocation5 + $0xac] ss:$12 sps:$4 sm:$0xff]   ;;  %v2454_v2 = vld [vmem:[#allocation5 + $0xa8] ss:$12 sps:$4 sm:$0xff]   ;;  %2255 = vmatprep.subr.bf16.mxu1 %v2848_v3  ;;  %v2455_v4 = vld [vmem:[#allocation5 + $0xb0] ss:$12 sps:$4 sm:$0xff]  }
  0x88   : > { %v2456_v5 = vld [vmem:[#allocation5 + $0x94] ss:$12 sps:$4 sm:$0xff]   ;;  %v2458_v6 = vld [vmem:[#allocation5 + $0x90] ss:$12 sps:$4 sm:$0xff]   ;;  %551 = vmatprep.subr.bf16.mxu0 %v2452_v1  ;;  %v2459_v7 = vld [vmem:[#allocation5 + $0x98] ss:$12 sps:$4 sm:$0xff]   ;;  %2256 = vmatpush3.bf16.msra.mxu1 %v2455_v4 }
  0x89   : > { %552 = vmatpush1.bf16.msra.mxu0 %v2454_v2  ;;  %2257 = vmatprep.subr.bf16.mxu1 %v2848_v3  ;;  %v2460_v12 = vld [vmem:[#allocation5 + $0x7c] ss:$12 sps:$4 sm:$0xff]   ;;  %v2462_v13 = vld [vmem:[#allocation5 + $0x78] ss:$12 sps:$4 sm:$0xff]   ;;  %v2466_v16 = vld [vmem:[#allocation5 + $0x60] ss:$12 sps:$4 sm:$0xff]  }
  0x8a   : > { %553 = vmatprep.subr.bf16.mxu0 %v2456_v5  ;;  %v2464_v15 = vld [vmem:[#allocation5 + $0x64] ss:$12 sps:$4 sm:$0xff]   ;;  %v2467_v17 = vld [vmem:[#allocation5 + $0x68] ss:$12 sps:$4 sm:$0xff]   ;;  %v2468_v18 = vld [vmem:[#allocation5 + $0x4c] ss:$12 sps:$4 sm:$0xff]  }
  0x8b   : > { %v2470_v19 = vld [vmem:[#allocation5 + $0x48] ss:$12 sps:$4 sm:$0xff]   ;;  %v2471_v20 = vld [vmem:[#allocation5 + $0x50] ss:$12 sps:$4 sm:$0xff]   ;;  %v2849_v22 = vmov 0   ;;  %vm2850_vm0 = vmmov 0  }
  0x8c   : > { %2258 = vmatpush3.bf16.msra.mxu1 %v2459_v7  ;;  %v2472_v21 = vld [vmem:[#allocation5 + $0x34] ss:$12 sps:$4 sm:$0xff]   ;;  %583 = vmatprep.mubr.bf16.mxu0 %v2849_v22  ;;  %v2474_v23 = vld [vmem:[#allocation5 + $0x30] ss:$12 sps:$4 sm:$0xff]   ;;  %v2475_v24 = vld [vmem:[#allocation5 + $0x38] ss:$12 sps:$4 sm:$0xff]  }
  0x8d   : > { %554 = vmatpush1.bf16.msra.mxu0 %v2458_v6  ;;  %2259 = vmatprep.subr.bf16.mxu1 %v2848_v3  ;;  %v2476_v25 = vld [vmem:[#allocation5 + $0x1c] ss:$12 sps:$4 sm:$0xff]   ;;  %v2478_v26 = vld [vmem:[#allocation5 + $0x18] ss:$12 sps:$4 sm:$0xff]   ;;  %v2479_v27 = vld [vmem:[#allocation5 + $0x20] ss:$12 sps:$4 sm:$0xff]  }
  0x8e   : > { %555 = vmatprep.subr.bf16.mxu0 %v2460_v12  ;;  %2271 = vmatprep.mubr.msk.bf16.mxu1 %vm2850_vm0, %v2848_v3  ;;  %v2480_v28 = vld [vmem:[#allocation5 + $0x4] ss:$12 sps:$4 sm:$0xff]   ;;  %v2482_v29 = vld [vmem:[#allocation5] ss:$12 sps:$4 sm:$0xff]   ;;  %v2483_v30 = vld [vmem:[#allocation5 + $0x8] ss:$12 sps:$4 sm:$0xff]  }
  0x8f   : > { %v2063_v35 = vld [vmem:[#allocation11] ss:$0 sm:$0xff]  ;;  %v2064_v37 = vld [vmem:[#allocation11 + $0x1] ss:$0 sm:$0xff]  ;;  %v3082_v42 = vshrl.u32 %v408_v41, 7  ;;  %vm635_vm1 = vcmask 261120  }
  0x90   : > { %2260 = vmatpush3.bf16.msra.mxu1 %v2463_v14  ;;  %v343_v44 = vld [vmem:[#allocation11 + $0x4] sm:$0x7]  ;;  %s2851_s28 = smov 96   ;;  %s2852_s8 = smov 32   ;;  %vm699_vm2 = vcmask 1043456   ;;  %vm683_vm3 = vcmask 64512  }
  0x91   : > { %556 = vmatpush1.bf16.msra.mxu0 %v2462_v13  ;;  %2261 = vmatprep.subr.bf16.mxu1 %v2848_v3  ;;  %v414_v43 = vsub.s32 1, %v3082_v42  ;;  %v418_v45 = vsub.s32 2, %v3082_v42  ;;  %v410_v49 = vsub.s32 0, %v3082_v42  ;;  %s2853_s17 = smov 64   ;;  %vm1092_vm4 = vcmask 523264   ;;  %s2174_s18 = sshll.u32 %s2911_s27, 7 }
  0x92   : > { %557 = vmatprep.subr.bf16.mxu0 %v2464_v15  ;;  %vm1094_vm5 = vcmask 785408   ;;  %s337_s19 = scalar_lea.vmem [#allocation13], %s2056_s25  ;;  %s1925_s13 = scalar_lea.hbm %s3225_s6, %s2174_s18 }
  0x93   : > { %v415_v46 = vrot.slane %v343_v44, %v414_v43  ;;  %v419_v52 = vrot.slane %v343_v44, %v418_v45  ;;  %v411_v56 = vrot.slane %v343_v44, %v410_v49  ;;  %s1927_s20 = sshll.u32 %s337_s19, 4  ;;  %s1914_s16 = scalar_lea.sflag [#allocation4], %s3039_s10  ;;  %s1928_s20 = int_to_ptr.vmem [resolvable:$true] %s1927_s20 }
  0x94   : > { %2262 = vmatpush3.bf16.msra.mxu1 %v2467_v17  ;;  %s2758_s30 = scalar_lea.vmem %s1928_s20, 128  ;;  %p3248_p8 = scmp.ne.s32.totalorder %s3237_s11, 0 }
  0x95   : > { %558 = vmatpush1.bf16.msra.mxu0 %v2466_v16  ;;  %2263 = vmatprep.subr.bf16.mxu1 %v2848_v3  ;;  %p2759_p5 = scmp.ne.s32.totalorder %s1928_s20, %s2758_s30  ;;  %s2854_s27 = smov [#allocation13]  }
  0x96   : > { %559 = vmatprep.subr.bf16.mxu0 %v2468_v18  ;;  %s2762_s9 = sshll.u32 %s2854_s27, 4  ;;  %s2763_s9 = int_to_ptr.vmem [resolvable:$false] %s2762_s9 }
  0x97   : > { %p2760_p10 = pnand %p2759_p5, %p3248_p8  ;;  %s2764_s25 = scalar_lea.vmem %s2763_s9, 256 }
  0x98   : > { %2264 = vmatpush3.bf16.msra.mxu1 %v2471_v20  ;;  %p2765_p1 = scmp.lt.s32.totalorder %s1928_s20, %s2763_s9  ;;  %p2766_p7 = scmp.lt.s32.totalorder %s2764_s25, %s2758_s30 }
  0x99   : > { %560 = vmatpush1.bf16.msra.mxu0 %v2470_v19  ;;  %2265 = vmatprep.subr.bf16.mxu1 %v2848_v3  ;;  %p2761_p11 = pneg %p2760_p10 }
  0x9a   : > { %561 = vmatprep.subr.bf16.mxu0 %v2472_v21  ;;  %p2767_p13 = por %p2766_p7, %p2765_p1 }
  0x9c   : > { %2266 = vmatpush3.bf16.msra.mxu1 %v2475_v24  ;;  %p2768_p9 = pnand %p2767_p13, %p2761_p11 }
  0x9d   : > { %562 = vmatpush1.bf16.msra.mxu0 %v2474_v23  ;;  %2267 = vmatprep.subr.bf16.mxu1 %v2848_v3 }
  0x9e   : > { %563 = vmatprep.subr.bf16.mxu0 %v2476_v25 }
  0xa0   : > { %2268 = vmatpush3.bf16.msra.mxu1 %v2479_v27 }
  0xa1   : > { %564 = vmatpush1.bf16.msra.mxu0 %v2478_v26  ;;  %2269 = vmatprep.subr.bf16.mxu1 %v2848_v3 }
  0xa2   : > { %565 = vmatprep.subr.bf16.mxu0 %v2480_v28 }
  0xa4   : > { %2270 = vmatpush3.bf16.msra.mxu1 %v2483_v30 }
  0xa5   : > { %566 = vmatpush1.bf16.msra.mxu0 %v2482_v29  ;;  %2275 = vmatprep.subr.bf16.mxu1 %v2848_v3 }
  0xa6   : > { %2299 = vmatprep.subr.bf16.mxu0 %v2848_v3 }
 0x110   : > { %v349_v8 = vpop.xlane.xlu0 %348 }
 0x111   : > { %v351_v9 = vmul.f32 0.0078125, %v349_v8 }
 0x113   : > { %v352_v10 = vsub.f32 %v3061_v0, %v351_v9 }
 0x115   : > { %v353_v11 = vmul.f32 %v352_v10, %v352_v10 }
 0x117   : > { %354 = vadd.xlane.f32.xlu0 %v353_v11 }
 0x1a0   : > { %v355_v31 = vpop.xlane.xlu0 %354 }
 0x1a1   : > { %v356_v32 = vmul.f32 0.0078125, %v355_v31 }
 0x1a3   : > { %v357_v33 = vadd.f32 1e-05, %v356_v32 }
 0x1a5   : > { %2572 = vrsqrt.f32 %v357_v33 }
 0x1b2   : > { %v2573_v34 = vpop.eup %2572 }
 0x1b3   : > { %v359_v36 = vmul.f32 %v2573_v34, %v352_v10 }
 0x1b5   : > { %v366_v38 = vmul.f32 %v2063_v35, %v359_v36 }
 0x1b7   : > { %v373_v39 = vadd.f32 %v2064_v37, %v366_v38 }
 0x1b9   : > { %v374_v40 = vpack.c.bf16 %v373_v39, %v373_v39 }
 0x1bb   : > { %584 = vmatmul.mubr.bf16.vlgmr.msra.gmra.mxu0 %v374_v40  ;;  %2272 = vmatmul.mubr.bf16.vlgmr.msra.gmra.mxu1 %v374_v40 }
 0x1bc   : > { %2277 = vmatprep.mubr.msk.bf16.mxu1 %vm2850_vm0, %v2848_v3  ;;  %2301 = vmatprep.mubr.msk.bf16.mxu0 %vm2850_vm0, %v2848_v3 }
 0x27b   : > { %v585_v47 = vpop.f32.mrf.mxu0  ;;  %v626_v48 = vpop.f32.mrf.mxu1 }
 0x27c   : > { %v627_v60 = vadd.f32 %v626_v48, %v419_v52  ;;  %v586_v62 = vadd.f32 %v585_v47, %v411_v56 }
 0x27d   : > { %v587_v50 = vpop.f32.mrf.mxu0  ;;  %v2273_v51 = vpop.f32.mrf.mxu1 }
 0x27e   : > { %v588_v53 = vadd.f32 %v587_v50, %v415_v46  ;;  %v3096_v63 = vpack.c.bf16 %v627_v60, %v627_v60  ;;  %v632_v1 = vpack.c.bf16 %v586_v62, %v586_v62 }
 0x27f   : > { %v589_v54 = vpop.f32.mrf.mxu0  ;;  %v629_v55 = vpop.f32.mrf.mxu1 }
 0x280   : > { %v633_v57 = vpack.c.bf16 %v588_v53, %v588_v53  ;;  %v701_v2 = vsel %vm699_vm2, %v3096_v63, 0 }
 0x281   : > { %v590_v58 = vpop.f32.mrf.mxu0  ;;  %v2274_v59 = vpop.f32.mrf.mxu1 }
 0x282   : > { %747 = vrot.lane.b32.xlu0 %v633_v57, %s2851_s28  ;;  %v640_v61 = vsel %vm635_vm1, %v633_v57, 0 }
 0x283   : > { %2276 = vmatpush3.bf16.xpose.msra.mxu1 %v640_v61 }
 0x284   : > { %2281 = vmatprep.subr.bf16.mxu1 %v2848_v3 }
 0x286   : > { %970 = vrot.lane.b32.xlu0 %v633_v57, %s2852_s8 }
 0x28a   : > { %2278 = vmatmul.mubr.msk.bf16.vlgmr.msra.gmra.mxu1 %vm635_vm1, %v632_v1 }
 0x28b   : > { %2282 = vmatpush3.bf16.msra.mxu1 %v701_v2  ;;  %2283 = vmatprep.mubr.msk.bf16.mxu1 %vm2850_vm0, %v2848_v3 }
 0x28c   : > { %2287 = vmatprep.subr.bf16.mxu1 %v2848_v3 }
 0x2f4   : > { %v748_v17 = vpop.permute.xlu0 %747 }
 0x2f5   : > { %v753_v27 = vsel %vm635_vm1, %v748_v17, 0 }
 0x2f8   : > { %v971_v21 = vpop.permute.xlu0 %970 }
 0x2f9   : > { %v976_v25 = vsel %vm635_vm1, %v971_v21, 0 }
 0x34a   : > { %v676_v4 = vpop.f32.mrf.mxu1 }
 0x34b   : > { %v682_v5 = vmul.f32 0.17677669, %v676_v4 }
 0x34c   : > { %v2279_v6 = vpop.f32.mrf.mxu1 }
 0x34d   : > { %v684_v7 = vsel %vm683_vm3, %v682_v5, -inf }
 0x34e   : > { %685 = vmax.xlane.f32.xlu1 %v684_v7  ;;  %v679_v8 = vpop.f32.mrf.mxu1 }
 0x350   : > { %v2280_v9 = vpop.f32.mrf.mxu1 }
 0x3d7   : > { %v686_v10 = vpop.xlane.xlu1 %685 }
 0x3d8   : > { %v687_v11 = vsub.f32 %v682_v5, %v686_v10 }
 0x3da   : > { %v688_v12 = vmul.f32 1.442695, %v687_v11 }
 0x3dc   : > { %2574 = vpow2.f32 %v688_v12 }
 0x3e9   : > { %v2575_v13 = vpop.eup %2574 }
 0x3ea   : > { %v690_v14 = vsel %vm683_vm3, %v2575_v13, 0.0 }
 0x3eb   : > { %691 = vadd.xlane.f32.xlu1 %v690_v14 }
 0x3fc   : > { %744 = vrot.lane.b32.xlu1 %v632_v1, %s2851_s28 }
 0x400   : > { %859 = vrot.lane.b32.xlu1 %v633_v57, %s2853_s17 }
 0x404   : > { %857 = vrot.lane.b32.xlu1 %v632_v1, %s2853_s17 }
 0x408   : > { %968 = vrot.lane.b32.xlu1 %v632_v1, %s2852_s8 }
 0x474   : > { %v692_v15 = vpop.xlane.xlu1 %691 }
 0x475   : > { %2576 = vrcp.f32 %v692_v15 }
 0x478   : > { %v745_v16 = vpop.permute.xlu1 %744 }
 0x47c   : > { %v860_v18 = vpop.permute.xlu1 %859 }
 0x47d   : > { %v865_v19 = vsel %vm635_vm1, %v860_v18, 0 }
 0x47e   : > { %2300 = vmatpush3.bf16.xpose.msra.mxu0 %v865_v19 }
 0x47f   : > { %2311 = vmatprep.subr.bf16.mxu0 %v2848_v3 }
 0x480   : > { %v858_v24 = vpop.permute.xlu1 %857 }
 0x482   : > { %v2577_v20 = vpop.eup %2576 }
 0x483   : > { %v694_v23 = vmul.f32 %v2577_v20, %v2575_v13 }
 0x484   : > { %v969_v28 = vpop.permute.xlu1 %968 }
 0x485   : > { %2302 = vmatmul.mubr.msk.bf16.vlgmr.msra.gmra.mxu0 %vm635_vm1, %v858_v24  ;;  %v695_v26 = vpack.c.bf16 %v694_v23, %v694_v23 }
 0x486   : > { %2312 = vmatpush3.bf16.xpose.msra.mxu0 %v976_v25  ;;  %2313 = vmatprep.mubr.msk.bf16.mxu0 %vm2850_vm0, %v2848_v3 }
 0x487   : > { %2284 = vmatmul.mubr.msk.bf16.vlgmr.msra.gmra.mxu1 %vm683_vm3, %v695_v26  ;;  %2323 = vmatprep.subr.bf16.mxu0 %v2848_v3 }
 0x488   : > { %2288 = vmatpush3.bf16.xpose.msra.mxu1 %v753_v27  ;;  %2289 = vmatprep.mubr.msk.bf16.mxu1 %vm2850_vm0, %v2848_v3  ;;  %v2484_v27 = vld [vmem:[#allocation7 + $0x38] sm:$0xff]  }
 0x489   : > { %2293 = vmatprep.subr.bf16.mxu1 %v2848_v3 }
 0x48d   : > { %2314 = vmatmul.mubr.msk.bf16.vlgmr.msra.gmra.mxu0 %vm635_vm1, %v969_v28  ;;  %v2485_v28 = vld [vmem:[#allocation7 + $0x30] sm:$0xff]  }
 0x48e   : > { %2339 = vmatprep.mubr.msk.bf16.mxu0 %vm2850_vm0, %v2848_v3  ;;  %2324 = vmatpush3.bf16.msra.mxu0 %v2484_v27  ;;  %v2522_v27 = vld [vmem:[#allocation8 + $0x40] ss:$16 sps:$4 sm:$0xff]  }
 0x48f   : > { %2290 = vmatmul.mubr.msk.bf16.vlgmr.msra.gmra.mxu1 %vm635_vm1, %v745_v16  ;;  %2325 = vmatprep.subr.bf16.mxu0 %v2848_v3 }
 0x490   : > { %2295 = vmatprep.mubr.msk.bf16.mxu1 %vm2850_vm0, %v2848_v3 }
 0x492   : > { %2326 = vmatpush3.bf16.msra.mxu0 %v2485_v28  ;;  %v2525_v28 = vld [vmem:[#allocation8 + $0x48] ss:$16 sps:$4 sm:$0xff]  }
 0x493   : > { %2327 = vmatprep.subr.bf16.mxu0 %v2848_v3 }
 0x545   : > { %v901_v29 = vpop.f32.mrf.mxu0 }
 0x546   : > { %v907_v30 = vmul.f32 0.17677669, %v901_v29  ;;  %v2486_v29 = vld [vmem:[#allocation7 + $0x28] sm:$0xff]  }
 0x547   : > { %v3129_v31 = vpop.f32.mrf.mxu1  ;;  %v2303_v32 = vpop.f32.mrf.mxu0  ;;  %2328 = vmatpush3.bf16.msra.mxu0 %v2486_v29  ;;  %v2530_v29 = vld [vmem:[#allocation8 + $0x24] ss:$16 sps:$4 sm:$0xff]  }
 0x548   : > { %v908_v33 = vsel %vm683_vm3, %v907_v30, -inf  ;;  %2329 = vmatprep.subr.bf16.mxu0 %v2848_v3  ;;  %v2488_v32 = vld [vmem:[#allocation7 + $0x18] sm:$0xff]  }
 0x549   : > { %909 = vmax.xlane.f32.xlu1 %v908_v33  ;;  %v2285_v34 = vpop.f32.mrf.mxu1  ;;  %v904_v35 = vpop.f32.mrf.mxu0  ;;  %v2489_v33 = vld [vmem:[#allocation7 + $0x10] sm:$0xff]  }
 0x54a   : > { %v2490_v34 = vld [vmem:[#allocation7 + $0x8] sm:$0xff]  }
 0x54b   : > { %v740_v36 = vpop.f32.mrf.mxu1  ;;  %v2304_v37 = vpop.f32.mrf.mxu0 }
 0x54c   : > { %v2491_v37 = vld [vmem:[#allocation7] sm:$0xff]  }
 0x54d   : > { %v2286_v38 = vpop.f32.mrf.mxu1  ;;  %v1012_v39 = vpop.f32.mrf.mxu0 }
 0x54e   : > { %v1018_v48 = vmul.f32 0.17677669, %v1012_v39 }
 0x54f   : > { %v789_v40 = vpop.f32.mrf.mxu1  ;;  %v2315_v41 = vpop.f32.mrf.mxu0 }
 0x550   : > { %v795_v44 = vmul.f32 0.17677669, %v789_v40  ;;  %v1019_v54 = vsel %vm683_vm3, %v1018_v48, -inf }
 0x551   : > { %v2291_v46 = vpop.f32.mrf.mxu1  ;;  %v1015_v47 = vpop.f32.mrf.mxu0 }
 0x552   : > { %v796_v50 = vsel %vm683_vm3, %v795_v44, -inf }
 0x553   : > { %v2316_v51 = vpop.f32.mrf.mxu0  ;;  %797 = vmax.xlane.f32.xlu0 %v796_v50  ;;  %v792_v52 = vpop.f32.mrf.mxu1 }
 0x555   : > { %v2292_v53 = vpop.f32.mrf.mxu1 }
 0x557   : > { %1020 = vmax.xlane.f32.xlu0 %v1019_v54 }
 0x5d2   : > { %v910_v55 = vpop.xlane.xlu1 %909 }
 0x5d3   : > { %v911_v56 = vsub.f32 %v907_v30, %v910_v55  ;;  %v2487_v30 = vld [vmem:[#allocation7 + $0x20] sm:$0xff]  }
 0x5d4   : > { %2330 = vmatpush3.bf16.msra.mxu0 %v2487_v30  ;;  %v2533_v30 = vld [vmem:[#allocation8 + $0x2c] ss:$16 sps:$4 sm:$0xff]  }
 0x5d5   : > { %v912_v57 = vmul.f32 1.442695, %v911_v56  ;;  %2331 = vmatprep.subr.bf16.mxu0 %v2848_v3 }
 0x5d7   : > { %2578 = vpow2.f32 %v912_v57 }
 0x5d8   : > { %2332 = vmatpush3.bf16.msra.mxu0 %v2488_v32  ;;  %v2528_v32 = vld [vmem:[#allocation8 + $0x20] ss:$16 sps:$4 sm:$0xff]  }
 0x5d9   : > { %2333 = vmatprep.subr.bf16.mxu0 %v2848_v3 }
 0x5dc   : > { %v798_v58 = vpop.xlane.xlu0 %797  ;;  %2334 = vmatpush3.bf16.msra.mxu0 %v2489_v33  ;;  %v2531_v33 = vld [vmem:[#allocation8 + $0x28] ss:$16 sps:$4 sm:$0xff]  }
 0x5dd   : > { %v799_v59 = vsub.f32 %v795_v44, %v798_v58  ;;  %2335 = vmatprep.subr.bf16.mxu0 %v2848_v3  ;;  %v2097_v58 = vld [vmem:[#allocation11 + $0x7] ss:$0 sm:$0xff] }
 0x5df   : > { %v800_v60 = vmul.f32 1.442695, %v799_v59 }
 0x5e0   : > { %v1021_v61 = vpop.xlane.xlu0 %1020  ;;  %2336 = vmatpush3.bf16.msra.mxu0 %v2490_v34  ;;  %v2536_v34 = vld [vmem:[#allocation8 + $0x4] ss:$16 sps:$4 sm:$0xff]  }
 0x5e1   : > { %2580 = vpow2.f32 %v800_v60  ;;  %v1022_v62 = vsub.f32 %v1018_v48, %v1021_v61  ;;  %2337 = vmatprep.subr.bf16.mxu0 %v2848_v3 }
 0x5e3   : > { %v1023_v1 = vmul.f32 1.442695, %v1022_v62 }
 0x5e4   : > { %v2579_v2 = vpop.eup %2578  ;;  %2338 = vmatpush3.bf16.msra.mxu0 %v2491_v37  ;;  %v2537_v37 = vld [vmem:[#allocation8 + $0x8] ss:$16 sps:$4 sm:$0xff]  }
 0x5e5   : > { %2582 = vpow2.f32 %v1023_v1  ;;  %v914_v4 = vsel %vm683_vm3, %v2579_v2, 0.0 }
 0x5e6   : > { %915 = vadd.xlane.f32.xlu0 %v914_v4  ;;  %v2492_v4 = vld [vmem:[#allocation8 + $0xe0] ss:$16 sps:$4 sm:$0xff]  }
 0x5ee   : > { %v2581_v5 = vpop.eup %2580 }
 0x5ef   : > { %v802_v6 = vsel %vm683_vm3, %v2581_v5, 0.0 }
 0x5f0   : > { %803 = vadd.xlane.f32.xlu0 %v802_v6  ;;  %v2497_v6 = vld [vmem:[#allocation8 + $0xec] ss:$16 sps:$4 sm:$0xff]  }
 0x5f1   : > { %1488 = vmatprep.subr.bf16.mxu0 %v2497_v6  ;;  %v2556_v6 = vld [vmem:[#allocation10 + $0x58] sm:$0xff]  }
 0x5f2   : > { %v2583_v7 = vpop.eup %2582 }
 0x5f3   : > { %v1025_v8 = vsel %vm683_vm3, %v2583_v7, 0.0 }
 0x5f4   : > { %1026 = vadd.xlane.f32.xlu1 %v1025_v8  ;;  %v2503_v8 = vld [vmem:[#allocation8 + $0xcc] ss:$16 sps:$4 sm:$0xff]  }
 0x605   : > { %920 = vrot.lane.b32.xlu1 %v3096_v63, %s2853_s17 }
 0x606   : > { %809 = vrot.lane.b32.xlu0 %v3096_v63, %s2851_s28 }
 0x609   : > { %1031 = vrot.lane.b32.xlu1 %v3096_v63, %s2852_s8 }
 0x66f   : > { %v916_v9 = vpop.xlane.xlu0 %915 }
 0x679   : > { %v804_v10 = vpop.xlane.xlu0 %803 }
 0x67a   : > { %2584 = vrcp.f32 %v804_v10 }
 0x67b   : > { %2586 = vrcp.f32 %v916_v9  ;;  %v2501_v9 = vld [vmem:[#allocation8 + $0xc8] ss:$16 sps:$4 sm:$0xff]  }
 0x67d   : > { %v810_v11 = vpop.permute.xlu0 %809  ;;  %v1027_v13 = vpop.xlane.xlu1 %1026 }
 0x67e   : > { %v815_v12 = vsel %vm699_vm2, %v810_v11, 0  ;;  %2588 = vrcp.f32 %v1027_v13  ;;  %v2506_v13 = vld [vmem:[#allocation8 + $0xa4] ss:$16 sps:$4 sm:$0xff]  }
 0x67f   : > { %2294 = vmatpush3.bf16.msra.mxu1 %v815_v12 }
 0x680   : > { %2305 = vmatprep.subr.bf16.mxu1 %v2848_v3 }
 0x681   : > { %v921_v16 = vpop.permute.xlu1 %920 }
 0x682   : > { %v926_v19 = vsel %vm699_vm2, %v921_v16, 0  ;;  %v2507_v16 = vld [vmem:[#allocation8 + $0xa8] ss:$16 sps:$4 sm:$0xff]  }
 0x685   : > { %v1032_v20 = vpop.permute.xlu1 %1031 }
 0x686   : > { %v1037_v24 = vsel %vm699_vm2, %v1032_v20, 0  ;;  %v2518_v20 = vld [vmem:[#allocation8 + $0x64] ss:$16 sps:$4 sm:$0xff]  }
 0x687   : > { %v2585_v14 = vpop.eup %2584 }
 0x688   : > { %v806_v15 = vmul.f32 %v2585_v14, %v2581_v5  ;;  %v2587_v18 = vpop.eup %2586  ;;  %v2495_v5 = vld [vmem:[#allocation8 + $0xe8] ss:$16 sps:$4 sm:$0xff]   ;;  %v2509_v14 = vld [vmem:[#allocation8 + $0xac] ss:$16 sps:$4 sm:$0xff]  }
 0x689   : > { %v918_v63 = vmul.f32 %v2587_v18, %v2579_v2  ;;  %v2512_v18 = vld [vmem:[#allocation8 + $0x84] ss:$16 sps:$4 sm:$0xff]  }
 0x68a   : > { %v807_v17 = vpack.c.bf16 %v806_v15, %v806_v15  ;;  %v2504_v15 = vld [vmem:[#allocation8 + $0xa0] ss:$16 sps:$4 sm:$0xff]  }
 0x68b   : > { %v919_v21 = vpack.c.bf16 %v918_v63, %v918_v63  ;;  %v2589_v23 = vpop.eup %2588  ;;  %v2515_v63 = vld [vmem:[#allocation8 + $0x8c] ss:$16 sps:$4 sm:$0xff]  }
 0x68c   : > { %2296 = vmatmul.mubr.msk.bf16.vlgmr.msra.gmra.mxu1 %vm683_vm3, %v807_v17  ;;  %v1029_v25 = vmul.f32 %v2589_v23, %v2583_v7  ;;  %v2500_v7 = vld [vmem:[#allocation8 + $0xc4] ss:$16 sps:$4 sm:$0xff]   ;;  %v2510_v17 = vld [vmem:[#allocation8 + $0x80] ss:$16 sps:$4 sm:$0xff]  }
 0x68d   : > { %2306 = vmatpush3.bf16.msra.mxu1 %v926_v19  ;;  %2307 = vmatprep.mubr.msk.bf16.mxu1 %vm2850_vm0, %v2848_v3  ;;  %v2513_v19 = vld [vmem:[#allocation8 + $0x88] ss:$16 sps:$4 sm:$0xff]   ;;  %v2516_v23 = vld [vmem:[#allocation8 + $0x60] ss:$16 sps:$4 sm:$0xff]  }
 0x68e   : > { %2317 = vmatprep.subr.bf16.mxu1 %v2848_v3  ;;  %v1030_v26 = vpack.c.bf16 %v1029_v25, %v1029_v25  ;;  %v2524_v25 = vld [vmem:[#allocation8 + $0x44] ss:$16 sps:$4 sm:$0xff]  }
 0x694   : > { %2308 = vmatmul.mubr.msk.bf16.vlgmr.msra.gmra.mxu1 %vm683_vm3, %v919_v21  ;;  %v2521_v21 = vld [vmem:[#allocation8 + $0x6c] ss:$16 sps:$4 sm:$0xff]  }
 0x695   : > { %2318 = vmatpush3.bf16.msra.mxu1 %v1037_v24  ;;  %2319 = vmatprep.mubr.msk.bf16.mxu1 %vm2850_vm0, %v2848_v3  ;;  %v2519_v24 = vld [vmem:[#allocation8 + $0x68] ss:$16 sps:$4 sm:$0xff]  }
 0x69c   : > { %2320 = vmatmul.mubr.msk.bf16.vlgmr.msra.gmra.mxu1 %vm683_vm3, %v1030_v26  ;;  %v2527_v26 = vld [vmem:[#allocation8 + $0x4c] ss:$16 sps:$4 sm:$0xff]  }
 0x69d   : > { %1479 = vmatprep.mubr.bf16.mxu1 %v2849_v22 }
 0x74c   : > { %v851_v35 = vpop.f32.mrf.mxu1 }
 0x74d   : > { %1080 = vrot.lane.b32.xlu1 %v851_v35, %s2852_s8  ;;  %v2539_v35 = vld [vmem:[#allocation8 + $0xc] ss:$16 sps:$4 sm:$0xff]  }
 0x74e   : > { %v2297_v36 = vpop.f32.mrf.mxu1 }
 0x74f   : > { %v2534_v36 = vld [vmem:[#allocation8] ss:$16 sps:$4 sm:$0xff]  }
 0x750   : > { %v854_v38 = vpop.f32.mrf.mxu1 }
 0x752   : > { %v2298_v39 = vpop.f32.mrf.mxu1 }
 0x754   : > { %v962_v40 = vpop.f32.mrf.mxu1 }
 0x755   : > { %1084 = vrot.lane.b32.xlu0 %v962_v40, %s2853_s17 }
 0x756   : > { %v2309_v41 = vpop.f32.mrf.mxu1 }
 0x758   : > { %v965_v44 = vpop.f32.mrf.mxu1 }
 0x759   : > { %v2106_v44 = vld [vmem:[#allocation11 + $0x2] ss:$0 sm:$0xff] }
 0x75a   : > { %v2310_v46 = vpop.f32.mrf.mxu1 }
 0x75c   : > { %v1073_v47 = vpop.f32.mrf.mxu1 }
 0x75d   : > { %1088 = vrot.lane.b32.xlu1 %v1073_v47, %s2851_s28  ;;  %v2107_v47 = vld [vmem:[#allocation11 + $0x3] ss:$0 sm:$0xff] }
 0x75e   : > { %v2321_v48 = vpop.f32.mrf.mxu1 }
 0x760   : > { %v1076_v50 = vpop.f32.mrf.mxu1 }
 0x762   : > { %v2322_v51 = vpop.f32.mrf.mxu1 }
 0x7bf   : > { %v1081_v52 = vpop.permute.xlu1 %1080 }
 0x7c0   : > { %v1091_v3 = vsel %vm635_vm1, %v3129_v31, %v1081_v52  ;;  %v2494_v31 = vld [vmem:[#allocation8 + $0xe4] ss:$16 sps:$4 sm:$0xff]   ;;  %v2540_v52 = vld [vmem:[#allocation10 + $0x78] sm:$0xff]  }
 0x7c1   : > { %1447 = vmatprep.subr.bf16.mxu1 %v2494_v31  ;;  %v2554_v31 = vld [vmem:[#allocation10 + $0x20] sm:$0xff]  }
 0x7c2   : > { %1448 = vmatpush1.bf16.msra.mxu1 %v2492_v4  ;;  %v2553_v4 = vld [vmem:[#allocation10 + $0xe0] sm:$0xff]  }
 0x7c3   : > { %1449 = vmatprep.subr.bf16.mxu1 %v2500_v7  ;;  %v2557_v7 = vld [vmem:[#allocation10 + $0xd8] sm:$0xff]  }
 0x7c7   : > { %v1085_v53 = vpop.permute.xlu0 %1084 }
 0x7c8   : > { %v1093_v54 = vsel %vm1092_vm4, %v1091_v3, %v1085_v53  ;;  %v2541_v53 = vld [vmem:[#allocation10 + $0xf8] sm:$0xff]  }
 0x7c9   : > { %v2542_v3 = vld [vmem:[#allocation10 + $0x38] sm:$0xff]  }
 0x7cf   : > { %v1089_v55 = vpop.permute.xlu1 %1088 }
 0x7d0   : > { %v1095_v56 = vsel %vm1094_vm5, %v1093_v54, %v1089_v55  ;;  %v2543_v54 = vld [vmem:[#allocation10 + $0xb8] sm:$0xff]   ;;  %v2544_v55 = vld [vmem:[#allocation10 + $0x70] sm:$0xff]  }
 0x7d1   : > { %v1096_v57 = vpack.c.bf16 %v1095_v56, %v1095_v56  ;;  %v2545_v56 = vld [vmem:[#allocation10 + $0xf0] sm:$0xff]  }
 0x7d3   : > { %2340 = vmatmul.mubr.bf16.vlgmr.msra.gmra.mxu0 %v1096_v57  ;;  %v2546_v57 = vld [vmem:[#allocation10 + $0x30] sm:$0xff]  }
 0x7d4   : > { %1520 = vmatprep.mubr.bf16.mxu0 %v2849_v22  ;;  %v2498_v22 = vld [vmem:[#allocation8 + $0xc0] ss:$16 sps:$4 sm:$0xff]   ;;  %1489 = vmatpush1.bf16.msra.mxu0 %v2495_v5 }
 0x7d5   : > { %1490 = vmatprep.subr.bf16.mxu0 %v2503_v8  ;;  %1450 = vmatpush1.bf16.msra.mxu1 %v2498_v22  ;;  %v2555_v5 = vld [vmem:[#allocation10 + $0xa0] sm:$0xff]   ;;  %v2558_v8 = vld [vmem:[#allocation10 + $0x18] sm:$0xff]  }
 0x7d6   : > { %1451 = vmatprep.subr.bf16.mxu1 %v2506_v13  ;;  %v2559_v22 = vld [vmem:[#allocation10 + $0x98] sm:$0xff]   ;;  %v2565_v13 = vld [vmem:[#allocation10 + $0xc8] sm:$0xff]  }
 0x7d8   : > { %1491 = vmatpush1.bf16.msra.mxu0 %v2501_v9  ;;  %v2560_v9 = vld [vmem:[#allocation10 + $0x50] sm:$0xff]  }
 0x7d9   : > { %1492 = vmatprep.subr.bf16.mxu0 %v2509_v14  ;;  %1452 = vmatpush1.bf16.msra.mxu1 %v2504_v15  ;;  %v2566_v14 = vld [vmem:[#allocation10 + $0x8] sm:$0xff]  }
 0x7da   : > { %1453 = vmatprep.subr.bf16.mxu1 %v2512_v18  ;;  %v2567_v15 = vld [vmem:[#allocation10 + $0x88] sm:$0xff]   ;;  %v2570_v18 = vld [vmem:[#allocation10] sm:$0xff]  }
 0x7dc   : > { %1493 = vmatpush1.bf16.msra.mxu0 %v2507_v16  ;;  %v2568_v16 = vld [vmem:[#allocation10 + $0x40] sm:$0xff]  }
 0x7dd   : > { %1494 = vmatprep.subr.bf16.mxu0 %v2515_v63  ;;  %1454 = vmatpush1.bf16.msra.mxu1 %v2510_v17  ;;  %v2569_v17 = vld [vmem:[#allocation10 + $0xc0] sm:$0xff]   ;;  %v345_v63 = vld [vmem:[#allocation11 + $0x8] sm:$0xf] }
 0x7de   : > { %1455 = vmatprep.subr.bf16.mxu1 %v2518_v20  ;;  %v1281_v20 = vsub.s32 3, %v3082_v42 }
 0x7e0   : > { %1495 = vmatpush1.bf16.msra.mxu0 %v2513_v19  ;;  %v2571_v19 = vld [vmem:[#allocation10 + $0x80] sm:$0xff]  }
 0x7e1   : > { %1496 = vmatprep.subr.bf16.mxu0 %v2521_v21  ;;  %1456 = vmatpush1.bf16.msra.mxu1 %v2516_v23  ;;  %v1270_v21 = vrot.slane %v345_v63, %v410_v49  ;;  %v1278_v23 = vrot.slane %v345_v63, %v418_v45 }
 0x7e2   : > { %1457 = vmatprep.subr.bf16.mxu1 %v2524_v25 }
 0x7e4   : > { %1497 = vmatpush1.bf16.msra.mxu0 %v2519_v24 }
 0x7e5   : > { %1498 = vmatprep.subr.bf16.mxu0 %v2527_v26  ;;  %1458 = vmatpush1.bf16.msra.mxu1 %v2522_v27  ;;  %v1274_v26 = vrot.slane %v345_v63, %v414_v43  ;;  %v1282_v27 = vrot.slane %v345_v63, %v1281_v20 }
 0x7e6   : > { %1459 = vmatprep.subr.bf16.mxu1 %v2530_v29 }
 0x7e8   : > { %1499 = vmatpush1.bf16.msra.mxu0 %v2525_v28 }
 0x7e9   : > { %1500 = vmatprep.subr.bf16.mxu0 %v2533_v30  ;;  %1460 = vmatpush1.bf16.msra.mxu1 %v2528_v32 }
 0x7ea   : > { %1461 = vmatprep.subr.bf16.mxu1 %v2536_v34 }
 0x7ec   : > { %1501 = vmatpush1.bf16.msra.mxu0 %v2531_v33 }
 0x7ed   : > { %1502 = vmatprep.subr.bf16.mxu0 %v2539_v35  ;;  %1462 = vmatpush1.bf16.msra.mxu1 %v2534_v36 }
 0x7ee   : > { %2211 = vmatprep.subr.bf16.mxu1 %v2540_v52 }
 0x7f0   : > { %1503 = vmatpush1.bf16.msra.mxu0 %v2537_v37 }
 0x7f1   : > { %2233 = vmatprep.subr.bf16.mxu0 %v2541_v53 }
 0x893   : > { %v1201_v59 = vpop.f32.mrf.mxu0 }
 0x894   : > { %v1202_v60 = vadd.f32 %v2097_v58, %v1201_v59  ;;  %v2547_v58 = vld [vmem:[#allocation10 + $0xb0] sm:$0xff]   ;;  %v2548_v59 = vld [vmem:[#allocation10 + $0x68] sm:$0xff]  }
 0x895   : > { %v2341_v61 = vpop.f32.mrf.mxu0 }
 0x896   : > { %v3170_v62 = vadd.f32 %v1202_v60, %v3061_v0  ;;  %v2549_v60 = vld [vmem:[#allocation10 + $0xe8] sm:$0xff]  }
 0x897   : > { %v1204_v1 = vpop.f32.mrf.mxu0  ;;  %v2550_v61 = vld [vmem:[#allocation10 + $0x28] sm:$0xff]  }
 0x898   : > { %1208 = vadd.xlane.f32.xlu0 %v3170_v62  ;;  %v2551_v1 = vld [vmem:[#allocation10 + $0xa8] sm:$0xff]  }
 0x899   : > { %v2342_v2 = vpop.f32.mrf.mxu0 }
 0x89a   : > { %v2552_v2 = vld [vmem:[#allocation10 + $0x60] sm:$0xff]  }
 0x921   : > { %v1209_v0 = vpop.xlane.xlu0 %1208 }
 0x922   : > { %v1210_v10 = vmul.f32 0.0078125, %v1209_v0  ;;  %v2561_v0 = vld [vmem:[#allocation10 + $0xd0] sm:$0xff]  }
 0x924   : > { %v1211_v11 = vsub.f32 %v3170_v62, %v1210_v10  ;;  %v2562_v10 = vld [vmem:[#allocation10 + $0x10] sm:$0xff]  }
 0x926   : > { %v1212_v12 = vmul.f32 %v1211_v11, %v1211_v11 }
 0x928   : > { %1213 = vadd.xlane.f32.xlu1 %v1212_v12  ;;  %v2564_v12 = vld [vmem:[#allocation10 + $0x48] sm:$0xff]  }
 0x9b1   : > { %v1214_v38 = vpop.xlane.xlu1 %1213 }
 0x9b2   : > { %v1215_v39 = vmul.f32 0.0078125, %v1214_v38 }
 0x9b4   : > { %v1216_v40 = vadd.f32 1e-05, %v1215_v39 }
 0x9b6   : > { %2590 = vrsqrt.f32 %v1216_v40 }
 0x9c3   : > { %v2591_v41 = vpop.eup %2590 }
 0x9c4   : > { %v1218_v46 = vmul.f32 %v2591_v41, %v1211_v11  ;;  %v2563_v11 = vld [vmem:[#allocation10 + $0x90] sm:$0xff]  }
 0x9c6   : > { %v1225_v48 = vmul.f32 %v2106_v44, %v1218_v46 }
 0x9c8   : > { %v1232_v50 = vadd.f32 %v2107_v47, %v1225_v48 }
 0x9ca   : > { %v1233_v51 = vpack.c.bf16 %v1232_v50, %v1232_v50 }
 0x9cc   : > { %1480 = vmatmul.mubr.bf16.vlgmr.msra.gmra.mxu1 %v1233_v51  ;;  %1521 = vmatmul.mubr.bf16.vlgmr.msra.gmra.mxu0 %v1233_v51 }
 0x9cd   : > { %2212 = vmatpush3.bf16.msra.mxu1 %v2542_v3  ;;  %2234 = vmatpush3.bf16.msra.mxu0 %v2543_v54 }
 0x9ce   : > { %2213 = vmatprep.subr.bf16.mxu1 %v2544_v55  ;;  %2235 = vmatprep.subr.bf16.mxu0 %v2545_v56 }
 0x9d1   : > { %2214 = vmatpush3.bf16.msra.mxu1 %v2546_v57  ;;  %2236 = vmatpush3.bf16.msra.mxu0 %v2547_v58 }
 0x9d2   : > { %2215 = vmatprep.subr.bf16.mxu1 %v2548_v59  ;;  %2237 = vmatprep.subr.bf16.mxu0 %v2549_v60 }
 0x9d5   : > { %2216 = vmatpush3.bf16.msra.mxu1 %v2550_v61  ;;  %2238 = vmatpush3.bf16.msra.mxu0 %v2551_v1 }
 0x9d6   : > { %2217 = vmatprep.subr.bf16.mxu1 %v2552_v2  ;;  %2239 = vmatprep.subr.bf16.mxu0 %v2553_v4 }
 0x9d9   : > { %2218 = vmatpush3.bf16.msra.mxu1 %v2554_v31  ;;  %2240 = vmatpush3.bf16.msra.mxu0 %v2555_v5 }
 0x9da   : > { %2219 = vmatprep.subr.bf16.mxu1 %v2556_v6  ;;  %2241 = vmatprep.subr.bf16.mxu0 %v2557_v7 }
 0x9dd   : > { %2220 = vmatpush3.bf16.msra.mxu1 %v2558_v8  ;;  %2242 = vmatpush3.bf16.msra.mxu0 %v2559_v22 }
 0x9de   : > { %2221 = vmatprep.subr.bf16.mxu1 %v2560_v9  ;;  %2243 = vmatprep.subr.bf16.mxu0 %v2561_v0 }
 0x9e1   : > { %2222 = vmatpush3.bf16.msra.mxu1 %v2562_v10  ;;  %2244 = vmatpush3.bf16.msra.mxu0 %v2563_v11 }
 0x9e2   : > { %2223 = vmatprep.subr.bf16.mxu1 %v2564_v12  ;;  %2245 = vmatprep.subr.bf16.mxu0 %v2565_v13 }
 0x9e5   : > { %2224 = vmatpush3.bf16.msra.mxu1 %v2566_v14  ;;  %2246 = vmatpush3.bf16.msra.mxu0 %v2567_v15 }
 0x9e6   : > { %2225 = vmatprep.subr.bf16.mxu1 %v2568_v16  ;;  %2247 = vmatprep.subr.bf16.mxu0 %v2569_v17  ;;  %v2140_v17 = vld [vmem:[#allocation11 + $0xc] ss:$0 sm:$0xff] }
 0x9e9   : > { %2226 = vmatpush3.bf16.msra.mxu1 %v2570_v18  ;;  %2248 = vmatpush3.bf16.msra.mxu0 %v2571_v19 }
 0xa8c   : > { %v1481_v24 = vpop.f32.mrf.mxu1  ;;  %v1522_v25 = vpop.f32.mrf.mxu0 }
 0xa8d   : > { %v1482_v28 = vadd.f32 %v1481_v24, %v1270_v21  ;;  %v1523_v29 = vadd.f32 %v1522_v25, %v1278_v23 }
 0xa8e   : > { %v1483_v30 = vpop.f32.mrf.mxu1  ;;  %v1524_v32 = vpop.f32.mrf.mxu0 }
 0xa8f   : > { %v1533_v33 = vmul.f32 %v1482_v28, %v1482_v28  ;;  %v1535_v34 = vmul.f32 %v1523_v29, %v1523_v29  ;;  %v1484_v35 = vadd.f32 %v1483_v30, %v1274_v26  ;;  %v1525_v36 = vadd.f32 %v1524_v32, %v1282_v27 }
 0xa90   : > { %v1485_v37 = vpop.f32.mrf.mxu1  ;;  %v1526_v38 = vpop.f32.mrf.mxu0  ;;  %v1529_v2 = vmul.f32 0.5, %v1482_v28  ;;  %v1531_v31 = vmul.f32 0.5, %v1523_v29 }
 0xa91   : > { %v1537_v49 = vmul.f32 %v1533_v33, %v1482_v28  ;;  %v1539_v39 = vmul.f32 %v1535_v34, %v1523_v29  ;;  %v1534_v40 = vmul.f32 %v1484_v35, %v1484_v35  ;;  %v1536_v45 = vmul.f32 %v1525_v36, %v1525_v36 }
 0xa92   : > { %v1486_v41 = vpop.f32.mrf.mxu1  ;;  %v1527_v44 = vpop.f32.mrf.mxu0  ;;  %v1530_v5 = vmul.f32 0.5, %v1484_v35  ;;  %v1532_v7 = vmul.f32 0.5, %v1525_v36 }
 0xa93   : > { %v1541_v46 = vmul.f32 0.044715, %v1537_v49  ;;  %v1543_v42 = vmul.f32 0.044715, %v1539_v39  ;;  %v1538_v43 = vmul.f32 %v1534_v40, %v1484_v35  ;;  %v1540_v47 = vmul.f32 %v1536_v45, %v1525_v36 }
 0xa95   : > { %v1545_v48 = vadd.f32 %v1541_v46, %v1482_v28  ;;  %v1547_v50 = vadd.f32 %v1543_v42, %v1523_v29  ;;  %v1542_v51 = vmul.f32 0.044715, %v1538_v43  ;;  %v1544_v52 = vmul.f32 0.044715, %v1540_v47 }
 0xa97   : > { %v1549_v53 = vmul.f32 0.7978846, %v1545_v48  ;;  %v1551_v3 = vmul.f32 0.7978846, %v1547_v50  ;;  %v1546_v54 = vadd.f32 %v1542_v51, %v1484_v35  ;;  %v1548_v55 = vadd.f32 %v1544_v52, %v1525_v36 }
 0xa99   : > { %2592 = vtanh.f32 %v1549_v53  ;;  %v1550_v56 = vmul.f32 0.7978846, %v1546_v54  ;;  %v1552_v57 = vmul.f32 0.7978846, %v1548_v55 }
 0xa9a   : > { %2594 = vtanh.f32 %v1551_v3 }
 0xa9b   : > { %2596 = vtanh.f32 %v1550_v56 }
 0xa9c   : > { %2598 = vtanh.f32 %v1552_v57 }
 0xaa6   : > { %v2593_v58 = vpop.eup %2592 }
 0xaa7   : > { %v2595_v59 = vpop.eup %2594  ;;  %v1557_v60 = vadd.f32 1.0, %v2593_v58 }
 0xaa8   : > { %v1559_v61 = vadd.f32 1.0, %v2595_v59  ;;  %v2597_v1 = vpop.eup %2596 }
 0xaa9   : > { %v2599_v4 = vpop.eup %2598  ;;  %v1558_v6 = vadd.f32 1.0, %v2597_v1  ;;  %v1561_v22 = vmul.f32 %v1557_v60, %v1529_v2 }
 0xaaa   : > { %v1560_v8 = vadd.f32 1.0, %v2599_v4  ;;  %v1563_v0 = vmul.f32 %v1559_v61, %v1531_v31 }
 0xaab   : > { %v1562_v9 = vmul.f32 %v1558_v6, %v1530_v5  ;;  %v1565_v13 = vpack.c.bf16 %v1561_v22, %v1561_v22 }
 0xaac   : > { %v1564_v10 = vmul.f32 %v1560_v8, %v1532_v7  ;;  %v1567_v14 = vpack.c.bf16 %v1563_v0, %v1563_v0 }
 0xaad   : > { %v1566_v11 = vpack.c.bf16 %v1562_v9, %v1562_v9 }
 0xaae   : > { %v1568_v12 = vpack.c.bf16 %v1564_v10, %v1564_v10 }
 0xaaf   : > { %1863 = vmatprep.mubr.bf16.mxu1 %v1566_v11 }
 0xab0   : > { %1903 = vmatprep.mubr.bf16.mxu0 %v1568_v12  ;;  %1864 = vmatmul.mubr.bf16.vlgmr.msra.gmra.mxu1 %v1565_v13 }
 0xab1   : > { %1904 = vmatmul.mubr.bf16.vlgmr.msra.gmra.mxu0 %v1567_v14 }
 0xb70   : > { %v2227_v15 = vpop.f32.mrf.mxu1 }
 0xb71   : > { %v2249_v16 = vpop.f32.mrf.mxu0 }
 0xb72   : > { %v2228_v18 = vpop.f32.mrf.mxu1 }
 0xb73   : > { %v2229_v19 = vadd.f32 %v2228_v18, %v2227_v15  ;;  %v2250_v63 = vpop.f32.mrf.mxu0 }
 0xb74   : > { %v2230_v20 = vpop.f32.mrf.mxu1  ;;  %v2251_v23 = vadd.f32 %v2250_v63, %v2249_v16 }
 0xb75   : > { %v1866_v21 = vadd.f32 %v2229_v19, %v2140_v17  ;;  %v2252_v24 = vpop.f32.mrf.mxu0 }
 0xb76   : > { %v2231_v25 = vpop.f32.mrf.mxu1 }
 0xb77   : > { %v1906_v26 = vadd.f32 %v2251_v23, %v1866_v21  ;;  %v2253_v27 = vpop.f32.mrf.mxu0 }
 0xb79   : > { %v1911_v28 = vadd.f32 %v1906_v26, %v3170_v62 }
 0xb7b   : > { %1912 = vst [vmem:[%s337_s19] sm:$0xff] %v1911_v28 }
 0xb7c   : > { %2771 = shalt.err (!%p2768_p9)
}
 0xb7d   : > { %s2772_s26 = scalar_lea.hbm %s1925_s13, 128  ;;  %s2776_s28 = scalar_lea.hbm %s3225_s6, 256 }
 0xb7e   : > { %p2773_p3 = scmp.ne.s32.totalorder %s1925_s13, %s2772_s26  ;;  %p2777_p0 = scmp.lt.s32.totalorder %s1925_s13, %s3225_s6 }
 0xb7f   : > { %p2778_p4 = scmp.lt.s32.totalorder %s2776_s28, %s2772_s26 }
 0xb80   : > { %p2774_p6 = pnand %p2773_p3, %p3248_p8 }
 0xb81   : > { %p2779_p2 = por %p2778_p4, %p2777_p0 }
 0xb82   : > { %p2775_p12 = pneg %p2774_p6 }
 0xb84   : > { %p2780_p5 = pnand %p2779_p2, %p2775_p12 }
 0xb86   : > { %2783 = shalt.err (!%p2780_p5)
}
 0xb87   : > { %2365 = dma.vmem_to_hbm [thread:$0]  (%p3248_p8), %s1928_s20, 128, %s1925_s13, %s1914_s16  }
 0xb88 PF: > { %s1939_s18 = sand.u32 1, %s2822_s21   ;;  %p3249_p10 = scmp.ne.s32.totalorder %s3238_s12, 0 }
 0xb89   : > { %p3250_p11 = scmp.ge.s32.totalorder %s2834_s24, 2  ;;  %s1940_s19 = scalar_lea.sflag [#allocation4], %s1939_s18 }
 0xb8b   : > { %p2388_p1 = pnand %p3250_p11, %p3249_p10 }
 0xb8d   : > { %p2389_p7 = pneg %p2388_p1 }
 0xb8f   : > { %2817 = dma.done.wait (%p2389_p7), %s1940_s19, 128  }
 0xb90   : > { %2819 = vsyncadd (%p2389_p7), %s1940_s19, 4294967168  ;;  %p22_p13 = scmp.ge.s32.totalorder %s2982_s7, 4   ;;  %s3251_s21 = smov %s2826_s22 }
 0xb91   : > { %s3252_s22 = smov %s2830_s23  ;;  %s3253_s23 = smov %s2994_s29 }
 0xb92   : > { %s3254_s24 = smov %s2982_s7  ;;  %24 = sbr.rel (!%p22_p13) target bundleno = 10 (0xa), region = 109 }
 0xb97   :  { %1945 = vsyncpa [#allocation3], 1 }
 0xb98   :  { %1947 = vsyncpa [#allocation3 + $0x1], 1 }
 0xb99   :  { %1948 = vsyncpa [#allocation6], 1 }
 0xb9a   :  { %1949 = vsyncpa [#allocation9], 1 }
 0xb9b   :  { %1950 = vsyncpa [#allocation12], 1 }
 0xb9c   :  { %1951 = vsyncpa [#allocation4], 1 }
 0xb9d   :  { %1953 = vsyncpa [#allocation4 + $0x1], 1 }

</bundles_post_ra>
